<compile_context>
chip_gen: v7x
topology: tpu7x:2x2x1
jax: 0.10.0
libtpu: 0.0.40
codegen_flags: <defaults>
</compile_context>

<pallas_src>
import functools

import jax
import jax.numpy as jnp
from jax.experimental import pallas as pl
from jax.experimental.pallas import tpu as pltpu

HIDDEN = 512
LANE = 128
ALIGN = 16  # sublane alignment valid for both f32 (8) and bf16 (16) x tiles


def _round_up(x: int, m: int) -> int:
    return ((x + m - 1) // m) * m


def _mlp_kernel(x_ref, w1_ref, b1_ref, w2_ref, b2_ref, w3_ref, b3_ref, o_ref):
    """Fused 3-layer MLP on one (tm, n_inp) batch tile.

    x: f32 or bf16 (cast only if needed), weights: bf16 (VMEM-resident),
    biases: f32. All matmuls accumulate in f32 on the MXU.
    """
    x = x_ref[...]
    if x.dtype != jnp.bfloat16:          # trace-time branch; no cast on bf16 path
        x = x.astype(jnp.bfloat16)

    # Layer 1: Linear + ReLU
    h1 = jnp.dot(x, w1_ref[...], preferred_element_type=jnp.float32)
    h1 = jnp.maximum(h1 + b1_ref[...], 0.0)

    # Layer 2: Linear + ReLU
    h2 = jnp.dot(h1.astype(jnp.bfloat16), w2_ref[...],
                 preferred_element_type=jnp.float32)
    h2 = jnp.maximum(h2 + b2_ref[...], 0.0)

    # Layer 3: Linear (logits, lane-padded to 128, no activation)
    logits = jnp.dot(h2.astype(jnp.bfloat16), w3_ref[...],
                     preferred_element_type=jnp.float32)
    o_ref[...] = (logits + b3_ref[...]).astype(o_ref.dtype)


def _pick_tm(B: int) -> int:
    """Batch-tile size. Multiple of 16 (bf16 sublane pack) except the tiny
    single-block case where the block equals the full array."""
    if B <= ALIGN:
        # One full-array block: no ragged handling, minimal DMA.
        return B
    if B <= 1024:
        # Split into (at least) 2 grid steps so v7x's two TensorCores both work.
        return _round_up(pl.cdiv(B, 2), ALIGN)
    # Large batch: big tiles (multiple of 256) amortize per-step overhead and
    # the per-tile MXU RHS pushes for the three back-to-back matmuls.
    return 512


@functools.partial(jax.jit, static_argnames=("n_out",))
def fully_connected_forward(x_nchw, params, n_out):
    """Forward pass of FullyConnected.

    x_nchw : (B, C, H, W) float32 or bfloat16
    params : dict with
        w1 (n_inp, 512) bf16, b1 (1, 512) f32,
        w2 (512, 512)  bf16, b2 (1, 512) f32,
        w3 (512, n_out_pad) bf16, b3 (1, n_out_pad) f32  (n_out_pad = 128*k)
    n_out  : true number of classes (<= n_out_pad)
    returns logits: (B, n_out) float32
    """
    B = x_nchw.shape[0]
    # nn.Flatten (reshape of contiguous NCHW is free — no HBM copy).
    x2d = x_nchw.reshape(B, -1)
    n_inp = x2d.shape[1]
    n_out_pad = params["w3"].shape[1]

    tm = _pick_tm(B)
    grid = (pl.cdiv(B, tm),)   # ragged last block handled by Pallas (no jnp.pad)

    def resident(arr):
        # Whole-array block, constant index_map -> DMA'd once, stays in VMEM
        # across the batch grid.
        return pl.BlockSpec(arr.shape, lambda i: (0, 0))

    out = pl.pallas_call(
        _mlp_kernel,
        out_shape=jax.ShapeDtypeStruct((B, n_out_pad), jnp.float32),
        grid=grid,
        in_specs=[
            pl.BlockSpec((tm, n_inp), lambda i: (i, 0)),   # x tile (pipelined)
            resident(params["w1"]), resident(params["b1"]),
            resident(params["w2"]), resident(params["b2"]),
            resident(params["w3"]), resident(params["b3"]),
        ],
        out_specs=pl.BlockSpec((tm, n_out_pad), lambda i: (i, 0)),
        compiler_params=pltpu.CompilerParams(
            dimension_semantics=("parallel",),      # shard batch across TCs (v7x)
            vmem_limit_bytes=48 * 1024 * 1024,      # < v7x 64 MiB physical VMEM
        ),
    )(x2d, params["w1"], params["b1"], params["w2"], params["b2"],
      params["w3"], params["b3"])

    return out[:, :n_out]


def init_params(key, n_inp, n_out, hidden=HIDDEN):
    """Deterministic init mimicking PyTorch nn.Linear default
    (uniform(-1/sqrt(fan_in), 1/sqrt(fan_in)) for weights and biases).

    Weights are stored (in_features, out_features) in bfloat16; biases
    (1, out_features) in float32. The last layer is lane-padded to a multiple
    of 128 output columns (padding columns are zero)."""
    keys = jax.random.split(key, 6)
    n_out_pad = _round_up(n_out, LANE)

    def linear(kw, kb, fan_in, fan_out, pad_to=None):
        bound = 1.0 / jnp.sqrt(fan_in)
        w = jax.random.uniform(kw, (fan_in, fan_out), jnp.float32, -bound, bound)
        b = jax.random.uniform(kb, (1, fan_out), jnp.float32, -bound, bound)
        if pad_to is not None and pad_to != fan_out:
            w = jnp.pad(w, ((0, 0), (0, pad_to - fan_out)))
            b = jnp.pad(b, ((0, 0), (0, pad_to - fan_out)))
        return w.astype(jnp.bfloat16), b

    w1, b1 = linear(keys[0], keys[1], n_inp, hidden)
    w2, b2 = linear(keys[2], keys[3], hidden, hidden)
    w3, b3 = linear(keys[4], keys[5], hidden, n_out, pad_to=n_out_pad)
    return {"w1": w1, "b1": b1, "w2": w2, "b2": b2, "w3": w3, "b3": b3}


def _reference_forward(x_nchw, params, n_out):
    """Pure-JAX reference with identical math (bf16 operands, f32 accumulation).
    NOTE: bf16 weights deviate ~2-3 decimal digits from an f32-exact PyTorch run."""
    x = x_nchw.reshape(x_nchw.shape[0], -1)
    h1 = jnp.dot(x.astype(jnp.bfloat16), params["w1"],
                 preferred_element_type=jnp.float32) + params["b1"]
    h1 = jnp.maximum(h1, 0.0)
    h2 = jnp.dot(h1.astype(jnp.bfloat16), params["w2"],
                 preferred_element_type=jnp.float32) + params["b2"]
    h2 = jnp.maximum(h2, 0.0)
    out = jnp.dot(h2.astype(jnp.bfloat16), params["w3"],
                  preferred_element_type=jnp.float32) + params["b3"]
    return out[:, :n_out]


if __name__ == "__main__":
    # Small shapes consistent with the module: images of C=4, H=W=16,
    # so n_inp = 4*16*16 = 1024; n_out = 10 classes; batch = 2.
    B, C, H, W = 2, 4, 16, 16
    n_inp = C * H * W
    n_out = 10

    key = jax.random.PRNGKey(0)
    kx, kp = jax.random.split(key)
    x = jax.random.normal(kx, (B, C, H, W), dtype=jnp.float32)
    params = init_params(kp, n_inp, n_out)

    ref = _reference_forward(x, params, n_out)

    # f32-activation path (cast to bf16 inside the kernel).
    logits = jax.block_until_ready(fully_connected_forward(x, params, n_out))
    assert logits.shape == (B, n_out)
    assert jnp.allclose(logits, ref, atol=1e-2, rtol=1e-2), "mismatch vs reference (f32 x)"

    # bf16-activation fast path (producer emits bf16 -> half the x HBM traffic).
    logits_bf16 = jax.block_until_ready(
        fully_connected_forward(x.astype(jnp.bfloat16), params, n_out))
    assert jnp.allclose(logits_bf16, ref, atol=1e-2, rtol=1e-2), "mismatch vs reference (bf16 x)"

    print("KERNEL_OK")
</pallas_src>

<mosaic_0001>
module attributes {stable_mosaic.version = 11 : i64} {
  func.func @_mlp_kernel(%arg0: i32, %arg1: memref<2x1024xf32, #tpu.memory_space<vmem>>, %arg2: memref<1024x512xbf16, #tpu.memory_space<vmem>>, %arg3: memref<1x512xf32, #tpu.memory_space<vmem>>, %arg4: memref<512x512xbf16, #tpu.memory_space<vmem>>, %arg5: memref<1x512xf32, #tpu.memory_space<vmem>>, %arg6: memref<512x128xbf16, #tpu.memory_space<vmem>>, %arg7: memref<1x128xf32, #tpu.memory_space<vmem>>, %arg8: memref<2x128xf32, #tpu.memory_space<vmem>>) attributes {dimension_semantics = [#tpu.dimension_semantics<parallel>], iteration_bounds = array<i64: 1>, scalar_prefetch = 0 : i64, scratch_operands = 0 : i64, tpu.core_type = #tpu.core_type<tc>, window_params = [{transform_indices = @transform_0, window_bounds = array<i64: 2, 1024>}, {pipeline_mode = #tpu.pipeline_mode<synchronous>, transform_indices = @transform_1, window_bounds = array<i64: 1024, 512>}, {pipeline_mode = #tpu.pipeline_mode<synchronous>, transform_indices = @transform_2, window_bounds = array<i64: 1, 512>}, {pipeline_mode = #tpu.pipeline_mode<synchronous>, transform_indices = @transform_3, window_bounds = array<i64: 512, 512>}, {pipeline_mode = #tpu.pipeline_mode<synchronous>, transform_indices = @transform_4, window_bounds = array<i64: 1, 512>}, {pipeline_mode = #tpu.pipeline_mode<synchronous>, transform_indices = @transform_5, window_bounds = array<i64: 512, 128>}, {pipeline_mode = #tpu.pipeline_mode<synchronous>, transform_indices = @transform_6, window_bounds = array<i64: 1, 128>}, {transform_indices = @transform_7, window_bounds = array<i64: 2, 128>}]} {
    %c0 = arith.constant 0 : index
    %c0_0 = arith.constant 0 : index
    %0 = vector.load %arg1[%c0, %c0_0] : memref<2x1024xf32, #tpu.memory_space<vmem>>, vector<2x1024xf32>
    %1 = arith.truncf %0 : vector<2x1024xf32> to vector<2x1024xbf16>
    %c0_1 = arith.constant 0 : index
    %c0_2 = arith.constant 0 : index
    %2 = vector.load %arg2[%c0_1, %c0_2] : memref<1024x512xbf16, #tpu.memory_space<vmem>>, vector<1024x512xbf16>
    %cst = arith.constant dense<0.000000e+00> : vector<2x512xf32>
    %3 = tpu.matmul %1, %2, %cst {dimension_numbers = #tpu.dot_dimension_numbers<[1], [0], [0], [1], [0, 0, 1, 1], [], []>} : vector<2x1024xbf16>, vector<1024x512xbf16>, vector<2x512xf32> -> vector<2x512xf32>
    %c0_3 = arith.constant 0 : index
    %c0_4 = arith.constant 0 : index
    %4 = vector.load %arg3[%c0_3, %c0_4] : memref<1x512xf32, #tpu.memory_space<vmem>>, vector<1x512xf32>
    %5 = vector.broadcast %4 : vector<1x512xf32> to vector<2x512xf32>
    %6 = arith.addf %3, %5 : vector<2x512xf32>
    %cst_5 = arith.constant 0.000000e+00 : f32
    %7 = vector.broadcast %cst_5 : f32 to vector<2x512xf32>
    %8 = arith.maximumf %6, %7 : vector<2x512xf32>
    %9 = arith.truncf %8 : vector<2x512xf32> to vector<2x512xbf16>
    %c0_6 = arith.constant 0 : index
    %c0_7 = arith.constant 0 : index
    %10 = vector.load %arg4[%c0_6, %c0_7] : memref<512x512xbf16, #tpu.memory_space<vmem>>, vector<512x512xbf16>
    %cst_8 = arith.constant dense<0.000000e+00> : vector<2x512xf32>
    %11 = tpu.matmul %9, %10, %cst_8 {dimension_numbers = #tpu.dot_dimension_numbers<[1], [0], [0], [1], [0, 0, 1, 1], [], []>} : vector<2x512xbf16>, vector<512x512xbf16>, vector<2x512xf32> -> vector<2x512xf32>
    %c0_9 = arith.constant 0 : index
    %c0_10 = arith.constant 0 : index
    %12 = vector.load %arg5[%c0_9, %c0_10] : memref<1x512xf32, #tpu.memory_space<vmem>>, vector<1x512xf32>
    %13 = vector.broadcast %12 : vector<1x512xf32> to vector<2x512xf32>
    %14 = arith.addf %11, %13 : vector<2x512xf32>
    %cst_11 = arith.constant 0.000000e+00 : f32
    %15 = vector.broadcast %cst_11 : f32 to vector<2x512xf32>
    %16 = arith.maximumf %14, %15 : vector<2x512xf32>
    %17 = arith.truncf %16 : vector<2x512xf32> to vector<2x512xbf16>
    %c0_12 = arith.constant 0 : index
    %c0_13 = arith.constant 0 : index
    %18 = vector.load %arg6[%c0_12, %c0_13] : memref<512x128xbf16, #tpu.memory_space<vmem>>, vector<512x128xbf16>
    %cst_14 = arith.constant dense<0.000000e+00> : vector<2x128xf32>
    %19 = tpu.matmul %17, %18, %cst_14 {dimension_numbers = #tpu.dot_dimension_numbers<[1], [0], [0], [1], [0, 0, 1, 1], [], []>} : vector<2x512xbf16>, vector<512x128xbf16>, vector<2x128xf32> -> vector<2x128xf32>
    %c0_15 = arith.constant 0 : index
    %c0_16 = arith.constant 0 : index
    %20 = vector.load %arg7[%c0_15, %c0_16] : memref<1x128xf32, #tpu.memory_space<vmem>>, vector<1x128xf32>
    %21 = vector.broadcast %20 : vector<1x128xf32> to vector<2x128xf32>
    %22 = arith.addf %19, %21 : vector<2x128xf32>
    %c0_17 = arith.constant 0 : index
    %c0_18 = arith.constant 0 : index
    %23 = vector.load %arg8[%c0_17, %c0_18] : memref<2x128xf32, #tpu.memory_space<vmem>>, vector<2x128xf32>
    tpu.vector_store %arg8[%c0_17, %c0_18], %22 {strides = array<i32>} : memref<2x128xf32, #tpu.memory_space<vmem>>, vector<2x128xf32>,
    return
  }
  func.func @transform_0(%arg0: i32) -> (i32, i32) {
    %c0_i32 = arith.constant 0 : i32
    %c0_i32_0 = arith.constant 0 : i32
    return %arg0, %c0_i32 : i32, i32
  }
  func.func @transform_1(%arg0: i32) -> (i32, i32) {
    %c0_i32 = arith.constant 0 : i32
    %c0_i32_0 = arith.constant 0 : i32
    %c0_i32_1 = arith.constant 0 : i32
    return %c0_i32, %c0_i32_0 : i32, i32
  }
  func.func @transform_2(%arg0: i32) -> (i32, i32) {
    %c0_i32 = arith.constant 0 : i32
    %c0_i32_0 = arith.constant 0 : i32
    %c0_i32_1 = arith.constant 0 : i32
    return %c0_i32, %c0_i32_0 : i32, i32
  }
  func.func @transform_3(%arg0: i32) -> (i32, i32) {
    %c0_i32 = arith.constant 0 : i32
    %c0_i32_0 = arith.constant 0 : i32
    %c0_i32_1 = arith.constant 0 : i32
    return %c0_i32, %c0_i32_0 : i32, i32
  }
  func.func @transform_4(%arg0: i32) -> (i32, i32) {
    %c0_i32 = arith.constant 0 : i32
    %c0_i32_0 = arith.constant 0 : i32
    %c0_i32_1 = arith.constant 0 : i32
    return %c0_i32, %c0_i32_0 : i32, i32
  }
  func.func @transform_5(%arg0: i32) -> (i32, i32) {
    %c0_i32 = arith.constant 0 : i32
    %c0_i32_0 = arith.constant 0 : i32
    %c0_i32_1 = arith.constant 0 : i32
    return %c0_i32, %c0_i32_0 : i32, i32
  }
  func.func @transform_6(%arg0: i32) -> (i32, i32) {
    %c0_i32 = arith.constant 0 : i32
    %c0_i32_0 = arith.constant 0 : i32
    %c0_i32_1 = arith.constant 0 : i32
    return %c0_i32, %c0_i32_0 : i32, i32
  }
  func.func @transform_7(%arg0: i32) -> (i32, i32) {
    %c0_i32 = arith.constant 0 : i32
    %c0_i32_0 = arith.constant 0 : i32
    return %arg0, %c0_i32 : i32, i32
  }
}

</mosaic_0001>

<bundles_post_ra>
// kernel: fully_connected_forward.1
= control target key start
LH: loop header
LB: loop body
LE: loop exit
PB: predicated region body
PF: predicated region fallthrough
CT: control target
= control target key end

     0   :  { %12 = vsyncpa [#allocation3], 0  ;;  %s4733_s0 = inlined_call_operand.vmem [shape: f32[2,1024], index: 0, kind: input, shape index: {}]   ;;  %s4734_s1 = inlined_call_operand.hbm [shape: bf16[1024,512], index: 1, kind: input, shape index: {}]   ;;  %s4735_s2 = inlined_call_operand.vmem [shape: f32[1,512], index: 2, kind: input, shape index: {}]   ;;  %s4736_s3 = inlined_call_operand.hbm [shape: bf16[512,512], index: 3, kind: input, shape index: {}]   ;;  %s4737_s4 = inlined_call_operand.vmem [shape: f32[1,512], index: 4, kind: input, shape index: {}]   ;;  %s4738_s5 = inlined_call_operand.hbm [shape: bf16[512,128], index: 5, kind: input, shape index: {}]   ;;  %s4739_s6 = inlined_call_operand.vmem [shape: f32[1,128], index: 6, kind: input, shape index: {}]   ;;  %s4740_s7 = inlined_call_operand.hbm [shape: f32[2,128], index: 7, kind: output, shape index: {}]  }
   0x1   :  { %13 = vsyncpa [#allocation6], 0 }
   0x2   :  { %14 = vsyncpa [#allocation4], 0  ;;  %s4553_s24 = smov [#allocation5]   ;;  %s4554_s26 = smov [#allocation2]  }
   0x3   :  { %s36_s25 = sshll.u32 %s4553_s24, 4  ;;  %s22_s27 = sshll.u32 %s4554_s26, 4  ;;  %s37_s25 = int_to_ptr.vmem [resolvable:$true] %s36_s25  ;;  %s4602_s27 = int_to_ptr.vmem [resolvable:$true] %s22_s27 }
   0x4   :  { %s4459_s30 = scalar_lea.hbm %s4736_s3, 16384 }
   0x5   :  { %p4460_p0 = scmp.ne.s32.totalorder %s4736_s3, %s4459_s30  ;;  %p4463_p1 = scmp.lt.u32.totalorder %s4459_s30, %s4736_s3 }
   0x7   :  { %p4465_p2 = pnand %p4463_p1, %p4460_p0 }
   0x9   :  { %4468 = shalt.err (!%p4465_p2)
}
   0xa   :  { %s4469_s12 = scalar_lea.vmem %s37_s25, 16384  ;;  %p4474_p4 = scmp.lt.s32.totalorder %s37_s25, %s37_s25 }
   0xb   :  { %p4470_p3 = scmp.ne.s32.totalorder %s37_s25, %s4469_s12  ;;  %p4475_p5 = scmp.lt.s32.totalorder %s4469_s12, %s4469_s12 }
   0xd   :  { %p4476_p6 = por %p4475_p5, %p4474_p4 }
   0xf   :  { %p4477_p7 = pnand %p4476_p6, %p4470_p3 }
  0x11   :  { %4480 = shalt.err (!%p4477_p7)
}
  0x12   :  { %s4555_s13 = smov 256   ;;  %s4556_s14 = smov 16  }
  0x13   :  { %42 = dma.hbm_to_vmem [thread:$0]  %s4736_s3, 16384, %s37_s25, [#allocation6], %s4555_s13, %s4555_s13, %s4556_s14  }
  0x14   :  { %s4481_s19 = scalar_lea.hbm %s4734_s1, 32768 }
  0x15   :  { %p4482_p8 = scmp.ne.s32.totalorder %s4734_s1, %s4481_s19  ;;  %p4485_p9 = scmp.lt.u32.totalorder %s4481_s19, %s4734_s1 }
  0x17   :  { %p4487_p10 = pnand %p4485_p9, %p4482_p8 }
  0x19   :  { %4490 = shalt.err (!%p4487_p10)
}
  0x1a   :  { %s4491_s24 = scalar_lea.vmem %s4602_s27, 32768  ;;  %p4496_p12 = scmp.lt.s32.totalorder %s4602_s27, %s4602_s27 }
  0x1b   :  { %p4492_p11 = scmp.ne.s32.totalorder %s4602_s27, %s4491_s24  ;;  %p4497_p13 = scmp.lt.s32.totalorder %s4491_s24, %s4491_s24 }
  0x1d   :  { %p4498_p0 = por %p4497_p13, %p4496_p12 }
  0x1f   :  { %p4499_p1 = pnand %p4498_p0, %p4492_p11 }
  0x21   :  { %4502 = shalt.err (!%p4499_p1)
}
  0x22   :  { %28 = dma.hbm_to_vmem [thread:$0]  %s4734_s1, 32768, %s4602_s27, [#allocation3], %s4555_s13, %s4555_s13, %s4556_s14  }
  0x23   :  { %s4557_s26 = smov [#allocation7]   ;;  %s4503_s8 = scalar_lea.hbm %s4738_s5, 4096 }
  0x24   :  { %s50_s28 = sshll.u32 %s4557_s26, 4  ;;  %p4504_p2 = scmp.ne.s32.totalorder %s4738_s5, %s4503_s8  ;;  %s51_s28 = int_to_ptr.vmem [resolvable:$true] %s50_s28 }
  0x25   :  { %p4507_p3 = scmp.lt.u32.totalorder %s4503_s8, %s4738_s5 }
  0x27   :  { %p4509_p4 = pnand %p4507_p3, %p4504_p2 }
  0x29   :  { %4512 = shalt.err (!%p4509_p4)
}
  0x2a   :  { %s4513_s15 = scalar_lea.vmem %s51_s28, 4096  ;;  %p4518_p6 = scmp.lt.s32.totalorder %s51_s28, %s51_s28 }
  0x2b   :  { %p4514_p5 = scmp.ne.s32.totalorder %s51_s28, %s4513_s15  ;;  %p4519_p7 = scmp.lt.s32.totalorder %s4513_s15, %s4513_s15 }
  0x2d   :  { %p4520_p8 = por %p4519_p7, %p4518_p6 }
  0x2f   :  { %p4521_p9 = pnand %p4520_p8, %p4514_p5 }
  0x31   :  { %4524 = shalt.err (!%p4521_p9)
}
  0x32   :  { %s4558_s1 = smov 64   ;;  %s4559_s27 = smov 4  }
  0x33   :  { %56 = dma.hbm_to_vmem [thread:$0]  %s4738_s5, 4096, %s51_s28, [#allocation6], %s4558_s1, %s4558_s1, %s4559_s27  }
  0x34   :  { %4547 = dma.done.wait [#allocation3], 32768  }
  0x35   :  { %4548 = vsyncadd [#allocation3], 4294934528 }
  0x36   :  { %4549 = dma.done.wait [#allocation6], 20480  }
  0x37   :  { %4550 = vsyncadd [#allocation6], 4294946816  ;;  %v3849_v0 = vld [vmem:[#allocation2 + $0x4] ss:$16 sps:$4 sm:$0xff]   ;;  %v3851_v1 = vld [vmem:[#allocation2 + $0xc] ss:$16 sps:$4 sm:$0xff]   ;;  %v77_v38 = vlaneseq }
  0x38   :  { %1681 = vmatprep.subr.bf16.mxu0 %v3849_v0  ;;  %v3853_v2 = vld [vmem:[#allocation2] ss:$16 sps:$4 sm:$0xff]   ;;  %v3854_v3 = vld [vmem:[#allocation2 + $0x8] ss:$16 sps:$4 sm:$0xff]   ;;  %1845 = vmatprep.subr.bf16.mxu1 %v3851_v1  ;;  %v3855_v4 = vld [vmem:[#allocation2 + $0x24] ss:$16 sps:$4 sm:$0xff]  }
  0x39   :  { %1682 = vmatpush1.bf16.msra.mxu0 %v3853_v2  ;;  %1846 = vmatpush1.bf16.msra.mxu1 %v3854_v3  ;;  %v3857_v5 = vld [vmem:[#allocation2 + $0x2c] ss:$16 sps:$4 sm:$0xff]   ;;  %v3859_v6 = vld [vmem:[#allocation2 + $0x20] ss:$16 sps:$4 sm:$0xff]   ;;  %v3860_v7 = vld [vmem:[#allocation2 + $0x28] ss:$16 sps:$4 sm:$0xff]  }
  0x3a   :  { %1683 = vmatprep.subr.bf16.mxu0 %v3855_v4  ;;  %1847 = vmatprep.subr.bf16.mxu1 %v3857_v5  ;;  %v3861_v8 = vld [vmem:[#allocation2 + $0x44] ss:$16 sps:$4 sm:$0xff]   ;;  %v3863_v9 = vld [vmem:[#allocation2 + $0x4c] ss:$16 sps:$4 sm:$0xff]   ;;  %v3865_v10 = vld [vmem:[#allocation2 + $0x40] ss:$16 sps:$4 sm:$0xff]  }
  0x3b   :  { %v3866_v11 = vld [vmem:[#allocation2 + $0x48] ss:$16 sps:$4 sm:$0xff]   ;;  %v3867_v12 = vld [vmem:[#allocation2 + $0x64] ss:$16 sps:$4 sm:$0xff]   ;;  %v3869_v13 = vld [vmem:[#allocation2 + $0x6c] ss:$16 sps:$4 sm:$0xff]  }
  0x3c   :  { %v3871_v14 = vld [vmem:[#allocation2 + $0x60] ss:$16 sps:$4 sm:$0xff]   ;;  %v3872_v15 = vld [vmem:[#allocation2 + $0x68] ss:$16 sps:$4 sm:$0xff]   ;;  %v3873_v16 = vld [vmem:[#allocation2 + $0x84] ss:$16 sps:$4 sm:$0xff]  }
  0x3d   :  { %1684 = vmatpush1.bf16.msra.mxu0 %v3859_v6  ;;  %1848 = vmatpush1.bf16.msra.mxu1 %v3860_v7  ;;  %v3875_v17 = vld [vmem:[#allocation2 + $0x8c] ss:$16 sps:$4 sm:$0xff]   ;;  %v3877_v18 = vld [vmem:[#allocation2 + $0x80] ss:$16 sps:$4 sm:$0xff]   ;;  %v3878_v19 = vld [vmem:[#allocation2 + $0x88] ss:$16 sps:$4 sm:$0xff]  }
  0x3e   :  { %1685 = vmatprep.subr.bf16.mxu0 %v3861_v8  ;;  %1849 = vmatprep.subr.bf16.mxu1 %v3863_v9  ;;  %v3879_v20 = vld [vmem:[#allocation2 + $0xa4] ss:$16 sps:$4 sm:$0xff]   ;;  %v3881_v21 = vld [vmem:[#allocation2 + $0xac] ss:$16 sps:$4 sm:$0xff]   ;;  %v3883_v22 = vld [vmem:[#allocation2 + $0xa0] ss:$16 sps:$4 sm:$0xff]  }
  0x3f   :  { %v3884_v23 = vld [vmem:[#allocation2 + $0xa8] ss:$16 sps:$4 sm:$0xff]   ;;  %v3885_v24 = vld [vmem:[#allocation2 + $0xc4] ss:$16 sps:$4 sm:$0xff]   ;;  %v3887_v25 = vld [vmem:[#allocation2 + $0xcc] ss:$16 sps:$4 sm:$0xff]  }
  0x40   :  { %v3889_v26 = vld [vmem:[#allocation2 + $0xc0] ss:$16 sps:$4 sm:$0xff]   ;;  %v3890_v27 = vld [vmem:[#allocation2 + $0xc8] ss:$16 sps:$4 sm:$0xff]   ;;  %v3891_v28 = vld [vmem:[#allocation2 + $0xe4] ss:$16 sps:$4 sm:$0xff]  }
  0x41   :  { %1686 = vmatpush1.bf16.msra.mxu0 %v3865_v10  ;;  %1850 = vmatpush1.bf16.msra.mxu1 %v3866_v11  ;;  %v3893_v29 = vld [vmem:[#allocation2 + $0xec] ss:$16 sps:$4 sm:$0xff]   ;;  %v3895_v30 = vld [vmem:[#allocation2 + $0xe0] ss:$16 sps:$4 sm:$0xff]   ;;  %v3896_v31 = vld [vmem:[#allocation2 + $0xe8] ss:$16 sps:$4 sm:$0xff]  }
  0x42   :  { %1687 = vmatprep.subr.bf16.mxu0 %v3867_v12  ;;  %1851 = vmatprep.subr.bf16.mxu1 %v3869_v13  ;;  %v3897_v32 = vld [vmem:[#allocation2 + $0x104] ss:$16 sps:$4 sm:$0xff]   ;;  %v3899_v33 = vld [vmem:[#allocation2 + $0x10c] ss:$16 sps:$4 sm:$0xff]   ;;  %v3901_v34 = vld [vmem:[#allocation2 + $0x100] ss:$16 sps:$4 sm:$0xff]  }
  0x43   :  { %v3902_v35 = vld [vmem:[#allocation2 + $0x108] ss:$16 sps:$4 sm:$0xff]   ;;  %v4560_v36 = vmov 1983009808   ;;  %v3903_v39 = vld [vmem:[#allocation2 + $0x124] ss:$16 sps:$4 sm:$0xff]  }
  0x44   :  { %v75_v37 = vunpack.c.l.s4 %v4560_v36  ;;  %v3905_v40 = vld [vmem:[#allocation2 + $0x12c] ss:$16 sps:$4 sm:$0xff]   ;;  %v3907_v41 = vld [vmem:[#allocation2 + $0x120] ss:$16 sps:$4 sm:$0xff]   ;;  %v4645_v43 = vshrl.u32 %v77_v38, 7  ;;  %s4561_s22 = smov [#allocation8]  }
  0x45   :  { %1688 = vmatpush1.bf16.msra.mxu0 %v3871_v14  ;;  %1852 = vmatpush1.bf16.msra.mxu1 %v3872_v15  ;;  %v3908_v44 = vld [vmem:[#allocation2 + $0x128] ss:$16 sps:$4 sm:$0xff]   ;;  %v3909_v45 = vld [vmem:[#allocation2 + $0x144] ss:$16 sps:$4 sm:$0xff]   ;;  %v3911_v46 = vld [vmem:[#allocation2 + $0x14c] ss:$16 sps:$4 sm:$0xff]  }
  0x46   :  { %1689 = vmatprep.subr.bf16.mxu0 %v3873_v16  ;;  %1853 = vmatprep.subr.bf16.mxu1 %v3875_v17  ;;  %v76_v42 = vunpack.c.0.s8 %v75_v37  ;;  %v3913_v47 = vld [vmem:[#allocation2 + $0x140] ss:$16 sps:$4 sm:$0xff]   ;;  %v3914_v48 = vld [vmem:[#allocation2 + $0x148] ss:$16 sps:$4 sm:$0xff]   ;;  %v3915_v50 = vld [vmem:[#allocation2 + $0x164] ss:$16 sps:$4 sm:$0xff]  }
  0x47   :  { %v3917_v51 = vld [vmem:[#allocation2 + $0x16c] ss:$16 sps:$4 sm:$0xff]   ;;  %v69_v52 = vld [vmem:[%s4733_s0] sm:$0xff]  ;;  %v3920_v55 = vld [vmem:[#allocation2 + $0x168] ss:$16 sps:$4 sm:$0xff]   ;;  %s3329_s23 = sshll.u32 %s4561_s22, 4  ;;  %s3330_s23 = int_to_ptr.vmem [resolvable:$true] %s3329_s23 }
  0x48   :  { %v4648_v49 = vsub.s32 %v76_v42, %v4645_v43  ;;  %v3919_v53 = vld [vmem:[#allocation2 + $0x160] ss:$16 sps:$4 sm:$0xff]   ;;  %v3921_v56 = vld [vmem:[#allocation2 + $0x184] ss:$16 sps:$4 sm:$0xff]   ;;  %v3923_v57 = vld [vmem:[#allocation2 + $0x18c] ss:$16 sps:$4 sm:$0xff]   ;;  %v73_v4 = vcombine.high %v69_v52, %v69_v52  ;;  %p4530_p11 = scmp.lt.s32.totalorder %s3330_s23, %s3330_s23 }
  0x49   :  { %1690 = vmatpush1.bf16.msra.mxu0 %v3877_v18  ;;  %1854 = vmatpush1.bf16.msra.mxu1 %v3878_v19  ;;  %v3925_v59 = vld [vmem:[#allocation2 + $0x180] ss:$16 sps:$4 sm:$0xff]   ;;  %v3926_v61 = vld [vmem:[#allocation2 + $0x188] ss:$16 sps:$4 sm:$0xff]   ;;  %v3927_v62 = vld [vmem:[#allocation2 + $0x1a4] ss:$16 sps:$4 sm:$0xff]  }
  0x4a   :  { %1691 = vmatprep.subr.bf16.mxu0 %v3879_v20  ;;  %1855 = vmatprep.subr.bf16.mxu1 %v3881_v21  ;;  %v80_v54 = vrot.slane %v69_v52, %v4648_v49  ;;  %v3929_v63 = vld [vmem:[#allocation2 + $0x1ac] ss:$16 sps:$4 sm:$0xff]   ;;  %v3931_v0 = vld [vmem:[#allocation2 + $0x1a0] ss:$16 sps:$4 sm:$0xff]   ;;  %v3932_v1 = vld [vmem:[#allocation2 + $0x1a8] ss:$16 sps:$4 sm:$0xff]   ;;  %v4655_v9 = vrot.slane %v73_v4, %v4648_v49 }
  0x4b   :  { %v3933_v2 = vld [vmem:[#allocation2 + $0x1c4] ss:$16 sps:$4 sm:$0xff]   ;;  %v3935_v3 = vld [vmem:[#allocation2 + $0x1cc] ss:$16 sps:$4 sm:$0xff]   ;;  %v3937_v5 = vld [vmem:[#allocation2 + $0x1c0] ss:$16 sps:$4 sm:$0xff]  }
  0x4c   :  { %v88_v58 = vcombine.high %v80_v54, %v80_v54  ;;  %v3938_v6 = vld [vmem:[#allocation2 + $0x1c8] ss:$16 sps:$4 sm:$0xff]   ;;  %v3939_v7 = vld [vmem:[#allocation2 + $0x1e4] ss:$16 sps:$4 sm:$0xff]   ;;  %v3941_v8 = vld [vmem:[#allocation2 + $0x1ec] ss:$16 sps:$4 sm:$0xff]   ;;  %v89_v14 = vcombine.high %v4655_v9, %v4655_v9  ;;  %v115_v16 = vpack.c.bf16 %v80_v54, %v80_v54 }
  0x4d   :  { %1692 = vmatpush1.bf16.msra.mxu0 %v3883_v22  ;;  %1856 = vmatpush1.bf16.msra.mxu1 %v3884_v23  ;;  %v3943_v10 = vld [vmem:[#allocation2 + $0x1e0] ss:$16 sps:$4 sm:$0xff]   ;;  %v3944_v11 = vld [vmem:[#allocation2 + $0x1e8] ss:$16 sps:$4 sm:$0xff]   ;;  %v3948_v12 = vld [vmem:[#allocation2 + $0x204] ss:$16 sps:$4 sm:$0xff]  }
  0x4e   :  { %1693 = vmatprep.subr.bf16.mxu0 %v3885_v24  ;;  %1857 = vmatprep.subr.bf16.mxu1 %v3887_v25  ;;  %v116_v60 = vpack.c.bf16 %v88_v58, %v88_v58  ;;  %v3951_v13 = vld [vmem:[#allocation2 + $0x20c] ss:$16 sps:$4 sm:$0xff]   ;;  %v3946_v15 = vld [vmem:[#allocation2 + $0x200] ss:$16 sps:$4 sm:$0xff]   ;;  %v3949_v17 = vld [vmem:[#allocation2 + $0x208] ss:$16 sps:$4 sm:$0xff]   ;;  %v118_v20 = vpack.c.bf16 %v89_v14, %v89_v14 }
  0x4f   :  { %v3954_v18 = vld [vmem:[#allocation2 + $0x224] ss:$16 sps:$4 sm:$0xff]   ;;  %v3957_v19 = vld [vmem:[#allocation2 + $0x22c] ss:$16 sps:$4 sm:$0xff]   ;;  %v3952_v21 = vld [vmem:[#allocation2 + $0x220] ss:$16 sps:$4 sm:$0xff]  }
  0x50   :  { %1713 = vmatprep.mubr.bf16.mxu0 %v116_v60  ;;  %1877 = vmatprep.mubr.bf16.mxu1 %v116_v60  ;;  %v3955_v22 = vld [vmem:[#allocation2 + $0x228] ss:$16 sps:$4 sm:$0xff]   ;;  %v3960_v23 = vld [vmem:[#allocation2 + $0x244] ss:$16 sps:$4 sm:$0xff]   ;;  %v3963_v24 = vld [vmem:[#allocation2 + $0x24c] ss:$16 sps:$4 sm:$0xff]  }
  0x51   :  { %1694 = vmatpush1.bf16.msra.mxu0 %v3889_v26  ;;  %1858 = vmatpush1.bf16.msra.mxu1 %v3890_v27  ;;  %v3958_v25 = vld [vmem:[#allocation2 + $0x240] ss:$16 sps:$4 sm:$0xff]   ;;  %v3961_v26 = vld [vmem:[#allocation2 + $0x248] ss:$16 sps:$4 sm:$0xff]   ;;  %v3966_v27 = vld [vmem:[#allocation2 + $0x264] ss:$16 sps:$4 sm:$0xff]  }
  0x52   :  { %1695 = vmatprep.subr.bf16.mxu0 %v3891_v28  ;;  %1859 = vmatprep.subr.bf16.mxu1 %v3893_v29  ;;  %v3969_v28 = vld [vmem:[#allocation2 + $0x26c] ss:$16 sps:$4 sm:$0xff]   ;;  %v3964_v29 = vld [vmem:[#allocation2 + $0x260] ss:$16 sps:$4 sm:$0xff]   ;;  %v3979_v38 = vld [vmem:[#allocation2 + $0x2a8] ss:$16 sps:$4 sm:$0xff]  }
  0x53   :  { %v3981_v36 = vld [vmem:[#allocation2 + $0x2ac] ss:$16 sps:$4 sm:$0xff]   ;;  %v3976_v37 = vld [vmem:[#allocation2 + $0x2a0] ss:$16 sps:$4 sm:$0xff]   ;;  %v3985_v42 = vld [vmem:[#allocation2 + $0x2c8] ss:$16 sps:$4 sm:$0xff]  }
  0x54   :  { %v3997_v52 = vld [vmem:[#allocation2 + $0x308] ss:$16 sps:$4 sm:$0xff]   ;;  %v4005_v54 = vld [vmem:[#allocation2 + $0x32c] ss:$16 sps:$4 sm:$0xff]   ;;  %v4038_v14 = vld [vmem:[#allocation2 + $0x3e4] ss:$16 sps:$4 sm:$0xff]  }
  0x55   :  { %1696 = vmatpush1.bf16.msra.mxu0 %v3895_v30  ;;  %1860 = vmatpush1.bf16.msra.mxu1 %v3896_v31  ;;  %v3967_v30 = vld [vmem:[#allocation2 + $0x268] ss:$16 sps:$4 sm:$0xff]   ;;  %v3972_v31 = vld [vmem:[#allocation2 + $0x284] ss:$16 sps:$4 sm:$0xff]   ;;  %v4011_v58 = vld [vmem:[#allocation2 + $0x34c] ss:$16 sps:$4 sm:$0xff]  }
  0x56   :  { %1697 = vmatprep.subr.bf16.mxu0 %v3897_v32  ;;  %1861 = vmatprep.subr.bf16.mxu1 %v3899_v33  ;;  %v3975_v32 = vld [vmem:[#allocation2 + $0x28c] ss:$16 sps:$4 sm:$0xff]   ;;  %v3970_v33 = vld [vmem:[#allocation2 + $0x280] ss:$16 sps:$4 sm:$0xff]   ;;  %v4009_v60 = vld [vmem:[#allocation2 + $0x348] ss:$16 sps:$4 sm:$0xff]  }
  0x57   :  { %v4021_v4 = vld [vmem:[#allocation2 + $0x388] ss:$16 sps:$4 sm:$0xff]   ;;  %s4525_s24 = scalar_lea.vmem %s3330_s23, 32 }
  0x58   :  { %p4526_p10 = scmp.ne.s32.totalorder %s3330_s23, %s4525_s24  ;;  %p4531_p12 = scmp.lt.s32.totalorder %s4525_s24, %s4525_s24 }
  0x59   :  { %1698 = vmatpush1.bf16.msra.mxu0 %v3901_v34  ;;  %1862 = vmatpush1.bf16.msra.mxu1 %v3902_v35  ;;  %v3973_v34 = vld [vmem:[#allocation2 + $0x288] ss:$16 sps:$4 sm:$0xff]   ;;  %v3978_v35 = vld [vmem:[#allocation2 + $0x2a4] ss:$16 sps:$4 sm:$0xff]  }
  0x5a   :  { %1699 = vmatprep.subr.bf16.mxu0 %v3903_v39  ;;  %1863 = vmatprep.subr.bf16.mxu1 %v3905_v40  ;;  %v3984_v39 = vld [vmem:[#allocation2 + $0x2c4] ss:$16 sps:$4 sm:$0xff]   ;;  %v3987_v40 = vld [vmem:[#allocation2 + $0x2cc] ss:$16 sps:$4 sm:$0xff]   ;;  %p4532_p13 = por %p4531_p12, %p4530_p11 }
  0x5c   :  { %p4533_p0 = pnand %p4532_p13, %p4526_p10 }
  0x5d   :  { %1700 = vmatpush1.bf16.msra.mxu0 %v3907_v41  ;;  %1864 = vmatpush1.bf16.msra.mxu1 %v3908_v44  ;;  %v3982_v41 = vld [vmem:[#allocation2 + $0x2c0] ss:$16 sps:$4 sm:$0xff]   ;;  %v3990_v44 = vld [vmem:[#allocation2 + $0x2e4] ss:$16 sps:$4 sm:$0xff]  }
  0x5e   :  { %1701 = vmatprep.subr.bf16.mxu0 %v3909_v45  ;;  %1865 = vmatprep.subr.bf16.mxu1 %v3911_v46  ;;  %v3993_v45 = vld [vmem:[#allocation2 + $0x2ec] ss:$16 sps:$4 sm:$0xff]   ;;  %v3988_v46 = vld [vmem:[#allocation2 + $0x2e0] ss:$16 sps:$4 sm:$0xff]  }
  0x61   :  { %1702 = vmatpush1.bf16.msra.mxu0 %v3913_v47  ;;  %1866 = vmatpush1.bf16.msra.mxu1 %v3914_v48  ;;  %v3991_v47 = vld [vmem:[#allocation2 + $0x2e8] ss:$16 sps:$4 sm:$0xff]   ;;  %v3996_v48 = vld [vmem:[#allocation2 + $0x304] ss:$16 sps:$4 sm:$0xff]  }
  0x62   :  { %1703 = vmatprep.subr.bf16.mxu0 %v3915_v50  ;;  %1867 = vmatprep.subr.bf16.mxu1 %v3917_v51  ;;  %v3999_v50 = vld [vmem:[#allocation2 + $0x30c] ss:$16 sps:$4 sm:$0xff]   ;;  %v3994_v51 = vld [vmem:[#allocation2 + $0x300] ss:$16 sps:$4 sm:$0xff]  }
  0x65   :  { %1704 = vmatpush1.bf16.msra.mxu0 %v3919_v53  ;;  %1868 = vmatpush1.bf16.msra.mxu1 %v3920_v55  ;;  %v4002_v53 = vld [vmem:[#allocation2 + $0x324] ss:$16 sps:$4 sm:$0xff]   ;;  %v4000_v55 = vld [vmem:[#allocation2 + $0x320] ss:$16 sps:$4 sm:$0xff]  }
  0x66   :  { %1705 = vmatprep.subr.bf16.mxu0 %v3921_v56  ;;  %1869 = vmatprep.subr.bf16.mxu1 %v3923_v57  ;;  %v4003_v56 = vld [vmem:[#allocation2 + $0x328] ss:$16 sps:$4 sm:$0xff]   ;;  %v4008_v57 = vld [vmem:[#allocation2 + $0x344] ss:$16 sps:$4 sm:$0xff]  }
  0x69   :  { %1706 = vmatpush1.bf16.msra.mxu0 %v3925_v59  ;;  %1870 = vmatpush1.bf16.msra.mxu1 %v3926_v61  ;;  %v4006_v59 = vld [vmem:[#allocation2 + $0x340] ss:$16 sps:$4 sm:$0xff]   ;;  %v4014_v61 = vld [vmem:[#allocation2 + $0x364] ss:$16 sps:$4 sm:$0xff]  }
  0x6a   :  { %1707 = vmatprep.subr.bf16.mxu0 %v3927_v62  ;;  %1871 = vmatprep.subr.bf16.mxu1 %v3929_v63  ;;  %v4017_v62 = vld [vmem:[#allocation2 + $0x36c] ss:$16 sps:$4 sm:$0xff]   ;;  %v4012_v63 = vld [vmem:[#allocation2 + $0x360] ss:$16 sps:$4 sm:$0xff]  }
  0x6d   :  { %1708 = vmatpush1.bf16.msra.mxu0 %v3931_v0  ;;  %1872 = vmatpush1.bf16.msra.mxu1 %v3932_v1  ;;  %v4015_v0 = vld [vmem:[#allocation2 + $0x368] ss:$16 sps:$4 sm:$0xff]   ;;  %v4020_v1 = vld [vmem:[#allocation2 + $0x384] ss:$16 sps:$4 sm:$0xff]  }
  0x6e   :  { %1709 = vmatprep.subr.bf16.mxu0 %v3933_v2  ;;  %1873 = vmatprep.subr.bf16.mxu1 %v3935_v3  ;;  %v4023_v2 = vld [vmem:[#allocation2 + $0x38c] ss:$16 sps:$4 sm:$0xff]   ;;  %v4018_v3 = vld [vmem:[#allocation2 + $0x380] ss:$16 sps:$4 sm:$0xff]  }
  0x71   :  { %1710 = vmatpush1.bf16.msra.mxu0 %v3937_v5  ;;  %1874 = vmatpush1.bf16.msra.mxu1 %v3938_v6  ;;  %v4026_v5 = vld [vmem:[#allocation2 + $0x3a4] ss:$16 sps:$4 sm:$0xff]   ;;  %v4029_v6 = vld [vmem:[#allocation2 + $0x3ac] ss:$16 sps:$4 sm:$0xff]  }
  0x72   :  { %1711 = vmatprep.subr.bf16.mxu0 %v3939_v7  ;;  %1875 = vmatprep.subr.bf16.mxu1 %v3941_v8  ;;  %v4024_v7 = vld [vmem:[#allocation2 + $0x3a0] ss:$16 sps:$4 sm:$0xff]   ;;  %v4027_v8 = vld [vmem:[#allocation2 + $0x3a8] ss:$16 sps:$4 sm:$0xff]  }
  0x75   :  { %1712 = vmatpush1.bf16.msra.mxu0 %v3943_v10  ;;  %1876 = vmatpush1.bf16.msra.mxu1 %v3944_v11  ;;  %v4032_v10 = vld [vmem:[#allocation2 + $0x3c4] ss:$16 sps:$4 sm:$0xff]   ;;  %v4035_v11 = vld [vmem:[#allocation2 + $0x3cc] ss:$16 sps:$4 sm:$0xff]  }
  0x76   :  { %1722 = vmatprep.subr.bf16.mxu0 %v3948_v12  ;;  %1886 = vmatprep.subr.bf16.mxu1 %v3951_v13  ;;  %v4030_v12 = vld [vmem:[#allocation2 + $0x3c0] ss:$16 sps:$4 sm:$0xff]   ;;  %v4033_v13 = vld [vmem:[#allocation2 + $0x3c8] ss:$16 sps:$4 sm:$0xff]  }
  0x78   :  { %1714 = vmatmul.mubr.bf16.vlgmr.msra.gmra.mrb[0].mxu0 %v115_v16  ;;  %1878 = vmatmul.mubr.bf16.vlgmr.msra.gmra.mrb[0].mxu1 %v115_v16  ;;  %v4036_v16 = vld [vmem:[#allocation2 + $0x3e0] ss:$16 sps:$4 sm:$0xff]  }
  0x79   :  { %1723 = vmatpush1.bf16.msra.mxu0 %v3946_v15  ;;  %1887 = vmatpush1.bf16.msra.mxu1 %v3949_v17  ;;  %v4041_v15 = vld [vmem:[#allocation2 + $0x3ec] ss:$16 sps:$4 sm:$0xff]   ;;  %v4039_v17 = vld [vmem:[#allocation2 + $0x3e8] ss:$16 sps:$4 sm:$0xff]  }
  0x7a   :  { %1724 = vmatprep.subr.bf16.mxu0 %v3954_v18  ;;  %1888 = vmatprep.subr.bf16.mxu1 %v3957_v19  ;;  %v4044_v18 = vld [vmem:[#allocation2 + $0x404] ss:$16 sps:$4 sm:$0xff]   ;;  %v4047_v19 = vld [vmem:[#allocation2 + $0x40c] ss:$16 sps:$4 sm:$0xff]  }
  0x7b   :  { %1754 = vmatprep.mubr.bf16.mxu0 %v118_v20  ;;  %1918 = vmatprep.mubr.bf16.mxu1 %v118_v20  ;;  %v4042_v20 = vld [vmem:[#allocation2 + $0x400] ss:$16 sps:$4 sm:$0xff]  }
  0x7d   :  { %1725 = vmatpush1.bf16.msra.mxu0 %v3952_v21  ;;  %1889 = vmatpush1.bf16.msra.mxu1 %v3955_v22  ;;  %v117_v21 = vpack.c.bf16 %v4655_v9, %v4655_v9  ;;  %v4045_v22 = vld [vmem:[#allocation2 + $0x408] ss:$16 sps:$4 sm:$0xff]  }
  0x7e   :  { %1726 = vmatprep.subr.bf16.mxu0 %v3960_v23  ;;  %1890 = vmatprep.subr.bf16.mxu1 %v3963_v24  ;;  %v4664_v23 = vld [vmem:[%s4733_s0 + $0x8] sm:$0xff]  ;;  %v4050_v24 = vld [vmem:[#allocation2 + $0x424] ss:$16 sps:$4 sm:$0xff]  }
  0x81   :  { %1727 = vmatpush1.bf16.msra.mxu0 %v3958_v25  ;;  %1891 = vmatpush1.bf16.msra.mxu1 %v3961_v26  ;;  %v4053_v25 = vld [vmem:[#allocation2 + $0x42c] ss:$16 sps:$4 sm:$0xff]   ;;  %v4668_v26 = vrot.slane %v4664_v23, %v4648_v49 }
  0x82   :  { %1728 = vmatprep.subr.bf16.mxu0 %v3966_v27  ;;  %1892 = vmatprep.subr.bf16.mxu1 %v3969_v28  ;;  %v4048_v27 = vld [vmem:[#allocation2 + $0x420] ss:$16 sps:$4 sm:$0xff]   ;;  %v4051_v28 = vld [vmem:[#allocation2 + $0x428] ss:$16 sps:$4 sm:$0xff]  }
  0x83   :  { %v105_v9 = vcombine.high %v4668_v26, %v4668_v26 }
  0x85   :  { %1729 = vmatpush1.bf16.msra.mxu0 %v3964_v29  ;;  %1893 = vmatpush1.bf16.msra.mxu1 %v3967_v30  ;;  %v4056_v29 = vld [vmem:[#allocation2 + $0x444] ss:$16 sps:$4 sm:$0xff]   ;;  %v4059_v30 = vld [vmem:[#allocation2 + $0x44c] ss:$16 sps:$4 sm:$0xff]  }
  0x86   :  { %1730 = vmatprep.subr.bf16.mxu0 %v3972_v31  ;;  %1894 = vmatprep.subr.bf16.mxu1 %v3975_v32  ;;  %v120_v31 = vpack.c.bf16 %v105_v9, %v105_v9  ;;  %v4054_v32 = vld [vmem:[#allocation2 + $0x440] ss:$16 sps:$4 sm:$0xff]  }
  0x87   :  { %v4132_v9 = vld [vmem:[#allocation2 + $0x5e0] ss:$16 sps:$4 sm:$0xff]  }
  0x89   :  { %1731 = vmatpush1.bf16.msra.mxu0 %v3970_v33  ;;  %1895 = vmatpush1.bf16.msra.mxu1 %v3973_v34  ;;  %v4057_v33 = vld [vmem:[#allocation2 + $0x448] ss:$16 sps:$4 sm:$0xff]   ;;  %v4062_v34 = vld [vmem:[#allocation2 + $0x464] ss:$16 sps:$4 sm:$0xff]  }
  0x8a   :  { %1732 = vmatprep.subr.bf16.mxu0 %v3978_v35  ;;  %1896 = vmatprep.subr.bf16.mxu1 %v3981_v36  ;;  %v4065_v35 = vld [vmem:[#allocation2 + $0x46c] ss:$16 sps:$4 sm:$0xff]   ;;  %v4060_v36 = vld [vmem:[#allocation2 + $0x460] ss:$16 sps:$4 sm:$0xff]  }
  0x8d   :  { %1733 = vmatpush1.bf16.msra.mxu0 %v3976_v37  ;;  %1897 = vmatpush1.bf16.msra.mxu1 %v3979_v38  ;;  %v4063_v37 = vld [vmem:[#allocation2 + $0x468] ss:$16 sps:$4 sm:$0xff]   ;;  %v4068_v38 = vld [vmem:[#allocation2 + $0x484] ss:$16 sps:$4 sm:$0xff]  }
  0x8e   :  { %1734 = vmatprep.subr.bf16.mxu0 %v3984_v39  ;;  %1898 = vmatprep.subr.bf16.mxu1 %v3987_v40  ;;  %v4071_v39 = vld [vmem:[#allocation2 + $0x48c] ss:$16 sps:$4 sm:$0xff]   ;;  %v4066_v40 = vld [vmem:[#allocation2 + $0x480] ss:$16 sps:$4 sm:$0xff]  }
  0x91   :  { %1735 = vmatpush1.bf16.msra.mxu0 %v3982_v41  ;;  %1899 = vmatpush1.bf16.msra.mxu1 %v3985_v42  ;;  %v4069_v41 = vld [vmem:[#allocation2 + $0x488] ss:$16 sps:$4 sm:$0xff]   ;;  %v4074_v42 = vld [vmem:[#allocation2 + $0x4a4] ss:$16 sps:$4 sm:$0xff]  }
  0x92   :  { %1736 = vmatprep.subr.bf16.mxu0 %v3990_v44  ;;  %1900 = vmatprep.subr.bf16.mxu1 %v3993_v45  ;;  %v4077_v44 = vld [vmem:[#allocation2 + $0x4ac] ss:$16 sps:$4 sm:$0xff]   ;;  %v4072_v45 = vld [vmem:[#allocation2 + $0x4a0] ss:$16 sps:$4 sm:$0xff]  }
  0x95   :  { %1737 = vmatpush1.bf16.msra.mxu0 %v3988_v46  ;;  %1901 = vmatpush1.bf16.msra.mxu1 %v3991_v47  ;;  %v4075_v46 = vld [vmem:[#allocation2 + $0x4a8] ss:$16 sps:$4 sm:$0xff]   ;;  %v4080_v47 = vld [vmem:[#allocation2 + $0x4c4] ss:$16 sps:$4 sm:$0xff]  }
  0x96   :  { %1738 = vmatprep.subr.bf16.mxu0 %v3996_v48  ;;  %1902 = vmatprep.subr.bf16.mxu1 %v3999_v50  ;;  %v4083_v48 = vld [vmem:[#allocation2 + $0x4cc] ss:$16 sps:$4 sm:$0xff]   ;;  %v4078_v50 = vld [vmem:[#allocation2 + $0x4c0] ss:$16 sps:$4 sm:$0xff]  }
  0x99   :  { %1739 = vmatpush1.bf16.msra.mxu0 %v3994_v51  ;;  %1903 = vmatpush1.bf16.msra.mxu1 %v3997_v52  ;;  %v4081_v51 = vld [vmem:[#allocation2 + $0x4c8] ss:$16 sps:$4 sm:$0xff]   ;;  %v4086_v52 = vld [vmem:[#allocation2 + $0x4e4] ss:$16 sps:$4 sm:$0xff]  }
  0x9a   :  { %1740 = vmatprep.subr.bf16.mxu0 %v4002_v53  ;;  %1904 = vmatprep.subr.bf16.mxu1 %v4005_v54  ;;  %v4089_v53 = vld [vmem:[#allocation2 + $0x4ec] ss:$16 sps:$4 sm:$0xff]   ;;  %v4084_v54 = vld [vmem:[#allocation2 + $0x4e0] ss:$16 sps:$4 sm:$0xff]  }
  0x9d   :  { %1741 = vmatpush1.bf16.msra.mxu0 %v4000_v55  ;;  %1905 = vmatpush1.bf16.msra.mxu1 %v4003_v56  ;;  %v4087_v55 = vld [vmem:[#allocation2 + $0x4e8] ss:$16 sps:$4 sm:$0xff]   ;;  %v4092_v56 = vld [vmem:[#allocation2 + $0x504] ss:$16 sps:$4 sm:$0xff]  }
  0x9e   :  { %1742 = vmatprep.subr.bf16.mxu0 %v4008_v57  ;;  %1906 = vmatprep.subr.bf16.mxu1 %v4011_v58  ;;  %v4095_v57 = vld [vmem:[#allocation2 + $0x50c] ss:$16 sps:$4 sm:$0xff]   ;;  %v4090_v58 = vld [vmem:[#allocation2 + $0x500] ss:$16 sps:$4 sm:$0xff]  }
  0xa1   :  { %1743 = vmatpush1.bf16.msra.mxu0 %v4006_v59  ;;  %1907 = vmatpush1.bf16.msra.mxu1 %v4009_v60  ;;  %v4093_v59 = vld [vmem:[#allocation2 + $0x508] ss:$16 sps:$4 sm:$0xff]   ;;  %v4098_v60 = vld [vmem:[#allocation2 + $0x524] ss:$16 sps:$4 sm:$0xff]  }
  0xa2   :  { %1744 = vmatprep.subr.bf16.mxu0 %v4014_v61  ;;  %1908 = vmatprep.subr.bf16.mxu1 %v4017_v62  ;;  %v4101_v61 = vld [vmem:[#allocation2 + $0x52c] ss:$16 sps:$4 sm:$0xff]   ;;  %v4096_v62 = vld [vmem:[#allocation2 + $0x520] ss:$16 sps:$4 sm:$0xff]  }
  0xa5   :  { %1745 = vmatpush1.bf16.msra.mxu0 %v4012_v63  ;;  %1909 = vmatpush1.bf16.msra.mxu1 %v4015_v0  ;;  %v4099_v63 = vld [vmem:[#allocation2 + $0x528] ss:$16 sps:$4 sm:$0xff]   ;;  %v4104_v0 = vld [vmem:[#allocation2 + $0x544] ss:$16 sps:$4 sm:$0xff]  }
  0xa6   :  { %1746 = vmatprep.subr.bf16.mxu0 %v4020_v1  ;;  %1910 = vmatprep.subr.bf16.mxu1 %v4023_v2  ;;  %v4107_v1 = vld [vmem:[#allocation2 + $0x54c] ss:$16 sps:$4 sm:$0xff]   ;;  %v4102_v2 = vld [vmem:[#allocation2 + $0x540] ss:$16 sps:$4 sm:$0xff]  }
  0xa9   :  { %1747 = vmatpush1.bf16.msra.mxu0 %v4018_v3  ;;  %1911 = vmatpush1.bf16.msra.mxu1 %v4021_v4  ;;  %v4105_v3 = vld [vmem:[#allocation2 + $0x548] ss:$16 sps:$4 sm:$0xff]   ;;  %v4110_v4 = vld [vmem:[#allocation2 + $0x564] ss:$16 sps:$4 sm:$0xff]  }
  0xaa   :  { %1748 = vmatprep.subr.bf16.mxu0 %v4026_v5  ;;  %1912 = vmatprep.subr.bf16.mxu1 %v4029_v6  ;;  %v4113_v5 = vld [vmem:[#allocation2 + $0x56c] ss:$16 sps:$4 sm:$0xff]   ;;  %v4108_v6 = vld [vmem:[#allocation2 + $0x560] ss:$16 sps:$4 sm:$0xff]  }
  0xad   :  { %1749 = vmatpush1.bf16.msra.mxu0 %v4024_v7  ;;  %1913 = vmatpush1.bf16.msra.mxu1 %v4027_v8  ;;  %v4111_v7 = vld [vmem:[#allocation2 + $0x568] ss:$16 sps:$4 sm:$0xff]   ;;  %v4116_v8 = vld [vmem:[#allocation2 + $0x584] ss:$16 sps:$4 sm:$0xff]  }
  0xae   :  { %1750 = vmatprep.subr.bf16.mxu0 %v4032_v10  ;;  %1914 = vmatprep.subr.bf16.mxu1 %v4035_v11  ;;  %v4119_v10 = vld [vmem:[#allocation2 + $0x58c] ss:$16 sps:$4 sm:$0xff]   ;;  %v4114_v11 = vld [vmem:[#allocation2 + $0x580] ss:$16 sps:$4 sm:$0xff]  }
  0xb1   :  { %1751 = vmatpush1.bf16.msra.mxu0 %v4030_v12  ;;  %1915 = vmatpush1.bf16.msra.mxu1 %v4033_v13  ;;  %v4117_v12 = vld [vmem:[#allocation2 + $0x588] ss:$16 sps:$4 sm:$0xff]   ;;  %v4122_v13 = vld [vmem:[#allocation2 + $0x5a4] ss:$16 sps:$4 sm:$0xff]  }
  0xb2   :  { %1752 = vmatprep.subr.bf16.mxu0 %v4038_v14  ;;  %1916 = vmatprep.subr.bf16.mxu1 %v4041_v15  ;;  %v4125_v14 = vld [vmem:[#allocation2 + $0x5ac] ss:$16 sps:$4 sm:$0xff]   ;;  %v4120_v15 = vld [vmem:[#allocation2 + $0x5a0] ss:$16 sps:$4 sm:$0xff]  }
  0xb5   :  { %1753 = vmatpush1.bf16.msra.mxu0 %v4036_v16  ;;  %1917 = vmatpush1.bf16.msra.mxu1 %v4039_v17  ;;  %v4123_v16 = vld [vmem:[#allocation2 + $0x5a8] ss:$16 sps:$4 sm:$0xff]   ;;  %v4128_v17 = vld [vmem:[#allocation2 + $0x5c4] ss:$16 sps:$4 sm:$0xff]  }
  0xb6   :  { %1763 = vmatprep.subr.bf16.mxu0 %v4044_v18  ;;  %1927 = vmatprep.subr.bf16.mxu1 %v4047_v19  ;;  %v4131_v18 = vld [vmem:[#allocation2 + $0x5cc] ss:$16 sps:$4 sm:$0xff]   ;;  %v90_v19 = vcombine.high %v4664_v23, %v4664_v23 }
  0xb8   :  { %1755 = vmatmul.mubr.bf16.vlgmr.msra.gmra.mrb[0].mxu0 %v117_v21  ;;  %1919 = vmatmul.mubr.bf16.vlgmr.msra.gmra.mrb[0].mxu1 %v117_v21  ;;  %v4129_v21 = vld [vmem:[#allocation2 + $0x5c8] ss:$16 sps:$4 sm:$0xff]  }
  0xb9   :  { %1764 = vmatpush1.bf16.msra.mxu0 %v4042_v20  ;;  %1928 = vmatpush1.bf16.msra.mxu1 %v4045_v22  ;;  %v4126_v20 = vld [vmem:[#allocation2 + $0x5c0] ss:$16 sps:$4 sm:$0xff]   ;;  %v4134_v22 = vld [vmem:[#allocation2 + $0x5e4] ss:$16 sps:$4 sm:$0xff]  }
  0xba   :  { %1765 = vmatprep.subr.bf16.mxu0 %v4050_v24  ;;  %1929 = vmatprep.subr.bf16.mxu1 %v4053_v25  ;;  %v4137_v24 = vld [vmem:[#allocation2 + $0x5ec] ss:$16 sps:$4 sm:$0xff]   ;;  %v4675_v25 = vrot.slane %v90_v19, %v4648_v49  ;;  %v4146_v49 = vld [vmem:[#allocation2 + $0x624] ss:$16 sps:$4 sm:$0xff]  }
  0xbb   :  { %1795 = vmatprep.mubr.bf16.mxu0 %v120_v31  ;;  %1959 = vmatprep.mubr.bf16.mxu1 %v120_v31  ;;  %v4138_v31 = vld [vmem:[#allocation2 + $0x600] ss:$16 sps:$4 sm:$0xff]   ;;  %v4218_v19 = vld [vmem:[#allocation2 + $0x7a4] ss:$16 sps:$4 sm:$0xff]  }
  0xbc   :  { %v106_v23 = vcombine.high %v4675_v25, %v4675_v25 }
  0xbd   :  { %1766 = vmatpush1.bf16.msra.mxu0 %v4048_v27  ;;  %1930 = vmatpush1.bf16.msra.mxu1 %v4051_v28  ;;  %v4135_v27 = vld [vmem:[#allocation2 + $0x5e8] ss:$16 sps:$4 sm:$0xff]   ;;  %v4140_v28 = vld [vmem:[#allocation2 + $0x604] ss:$16 sps:$4 sm:$0xff]  }
  0xbe   :  { %1767 = vmatprep.subr.bf16.mxu0 %v4056_v29  ;;  %1931 = vmatprep.subr.bf16.mxu1 %v4059_v30  ;;  %v4143_v29 = vld [vmem:[#allocation2 + $0x60c] ss:$16 sps:$4 sm:$0xff]   ;;  %v119_v30 = vpack.c.bf16 %v4668_v26, %v4668_v26  ;;  %v4150_v26 = vld [vmem:[#allocation2 + $0x640] ss:$16 sps:$4 sm:$0xff]  }
  0xc1   :  { %1768 = vmatpush1.bf16.msra.mxu0 %v4054_v32  ;;  %1932 = vmatpush1.bf16.msra.mxu1 %v4057_v33  ;;  %v4141_v32 = vld [vmem:[#allocation2 + $0x608] ss:$16 sps:$4 sm:$0xff]   ;;  %v4149_v33 = vld [vmem:[#allocation2 + $0x62c] ss:$16 sps:$4 sm:$0xff]  }
  0xc2   :  { %1769 = vmatprep.subr.bf16.mxu0 %v4062_v34  ;;  %1933 = vmatprep.subr.bf16.mxu1 %v4065_v35  ;;  %v122_v34 = vpack.c.bf16 %v106_v23, %v106_v23  ;;  %v4144_v35 = vld [vmem:[#allocation2 + $0x620] ss:$16 sps:$4 sm:$0xff]   ;;  %v4233_v23 = vld [vmem:[#allocation2 + $0x7ec] ss:$16 sps:$4 sm:$0xff]  }
  0xc5   :  { %1770 = vmatpush1.bf16.msra.mxu0 %v4060_v36  ;;  %1934 = vmatpush1.bf16.msra.mxu1 %v4063_v37  ;;  %v4147_v36 = vld [vmem:[#allocation2 + $0x628] ss:$16 sps:$4 sm:$0xff]   ;;  %v4152_v37 = vld [vmem:[#allocation2 + $0x644] ss:$16 sps:$4 sm:$0xff]  }
  0xc6   :  { %1771 = vmatprep.subr.bf16.mxu0 %v4068_v38  ;;  %1935 = vmatprep.subr.bf16.mxu1 %v4071_v39  ;;  %v4155_v38 = vld [vmem:[#allocation2 + $0x64c] ss:$16 sps:$4 sm:$0xff]   ;;  %v4153_v39 = vld [vmem:[#allocation2 + $0x648] ss:$16 sps:$4 sm:$0xff]  }
  0xc9   :  { %1772 = vmatpush1.bf16.msra.mxu0 %v4066_v40  ;;  %1936 = vmatpush1.bf16.msra.mxu1 %v4069_v41  ;;  %v4158_v40 = vld [vmem:[#allocation2 + $0x664] ss:$16 sps:$4 sm:$0xff]   ;;  %v4161_v41 = vld [vmem:[#allocation2 + $0x66c] ss:$16 sps:$4 sm:$0xff]  }
  0xca   :  { %1773 = vmatprep.subr.bf16.mxu0 %v4074_v42  ;;  %1937 = vmatprep.subr.bf16.mxu1 %v4077_v44  ;;  %v4156_v42 = vld [vmem:[#allocation2 + $0x660] ss:$16 sps:$4 sm:$0xff]   ;;  %v4159_v44 = vld [vmem:[#allocation2 + $0x668] ss:$16 sps:$4 sm:$0xff]  }
  0xcd   :  { %1774 = vmatpush1.bf16.msra.mxu0 %v4072_v45  ;;  %1938 = vmatpush1.bf16.msra.mxu1 %v4075_v46  ;;  %v4164_v45 = vld [vmem:[#allocation2 + $0x684] ss:$16 sps:$4 sm:$0xff]   ;;  %v4167_v46 = vld [vmem:[#allocation2 + $0x68c] ss:$16 sps:$4 sm:$0xff]  }
  0xce   :  { %1775 = vmatprep.subr.bf16.mxu0 %v4080_v47  ;;  %1939 = vmatprep.subr.bf16.mxu1 %v4083_v48  ;;  %v4162_v47 = vld [vmem:[#allocation2 + $0x680] ss:$16 sps:$4 sm:$0xff]   ;;  %v4165_v48 = vld [vmem:[#allocation2 + $0x688] ss:$16 sps:$4 sm:$0xff]  }
  0xd1   :  { %1776 = vmatpush1.bf16.msra.mxu0 %v4078_v50  ;;  %1940 = vmatpush1.bf16.msra.mxu1 %v4081_v51  ;;  %v4170_v50 = vld [vmem:[#allocation2 + $0x6a4] ss:$16 sps:$4 sm:$0xff]   ;;  %v4173_v51 = vld [vmem:[#allocation2 + $0x6ac] ss:$16 sps:$4 sm:$0xff]  }
  0xd2   :  { %1777 = vmatprep.subr.bf16.mxu0 %v4086_v52  ;;  %1941 = vmatprep.subr.bf16.mxu1 %v4089_v53  ;;  %v4168_v52 = vld [vmem:[#allocation2 + $0x6a0] ss:$16 sps:$4 sm:$0xff]   ;;  %v4171_v53 = vld [vmem:[#allocation2 + $0x6a8] ss:$16 sps:$4 sm:$0xff]  }
  0xd5   :  { %1778 = vmatpush1.bf16.msra.mxu0 %v4084_v54  ;;  %1942 = vmatpush1.bf16.msra.mxu1 %v4087_v55  ;;  %v4176_v54 = vld [vmem:[#allocation2 + $0x6c4] ss:$16 sps:$4 sm:$0xff]   ;;  %v4179_v55 = vld [vmem:[#allocation2 + $0x6cc] ss:$16 sps:$4 sm:$0xff]  }
  0xd6   :  { %1779 = vmatprep.subr.bf16.mxu0 %v4092_v56  ;;  %1943 = vmatprep.subr.bf16.mxu1 %v4095_v57  ;;  %v4174_v56 = vld [vmem:[#allocation2 + $0x6c0] ss:$16 sps:$4 sm:$0xff]   ;;  %v4177_v57 = vld [vmem:[#allocation2 + $0x6c8] ss:$16 sps:$4 sm:$0xff]  }
  0xd9   :  { %1780 = vmatpush1.bf16.msra.mxu0 %v4090_v58  ;;  %1944 = vmatpush1.bf16.msra.mxu1 %v4093_v59  ;;  %v4182_v58 = vld [vmem:[#allocation2 + $0x6e4] ss:$16 sps:$4 sm:$0xff]   ;;  %v4185_v59 = vld [vmem:[#allocation2 + $0x6ec] ss:$16 sps:$4 sm:$0xff]  }
  0xda   :  { %1781 = vmatprep.subr.bf16.mxu0 %v4098_v60  ;;  %1945 = vmatprep.subr.bf16.mxu1 %v4101_v61  ;;  %v4180_v60 = vld [vmem:[#allocation2 + $0x6e0] ss:$16 sps:$4 sm:$0xff]   ;;  %v4183_v61 = vld [vmem:[#allocation2 + $0x6e8] ss:$16 sps:$4 sm:$0xff]  }
  0xdd   :  { %1782 = vmatpush1.bf16.msra.mxu0 %v4096_v62  ;;  %1946 = vmatpush1.bf16.msra.mxu1 %v4099_v63  ;;  %v4188_v62 = vld [vmem:[#allocation2 + $0x704] ss:$16 sps:$4 sm:$0xff]   ;;  %v4191_v63 = vld [vmem:[#allocation2 + $0x70c] ss:$16 sps:$4 sm:$0xff]  }
  0xde   :  { %1783 = vmatprep.subr.bf16.mxu0 %v4104_v0  ;;  %1947 = vmatprep.subr.bf16.mxu1 %v4107_v1  ;;  %v4186_v0 = vld [vmem:[#allocation2 + $0x700] ss:$16 sps:$4 sm:$0xff]   ;;  %v4189_v1 = vld [vmem:[#allocation2 + $0x708] ss:$16 sps:$4 sm:$0xff]  }
  0xe1   :  { %1784 = vmatpush1.bf16.msra.mxu0 %v4102_v2  ;;  %1948 = vmatpush1.bf16.msra.mxu1 %v4105_v3  ;;  %v4194_v2 = vld [vmem:[#allocation2 + $0x724] ss:$16 sps:$4 sm:$0xff]   ;;  %v4197_v3 = vld [vmem:[#allocation2 + $0x72c] ss:$16 sps:$4 sm:$0xff]  }
  0xe2   :  { %1785 = vmatprep.subr.bf16.mxu0 %v4110_v4  ;;  %1949 = vmatprep.subr.bf16.mxu1 %v4113_v5  ;;  %v4192_v4 = vld [vmem:[#allocation2 + $0x720] ss:$16 sps:$4 sm:$0xff]   ;;  %v4195_v5 = vld [vmem:[#allocation2 + $0x728] ss:$16 sps:$4 sm:$0xff]  }
  0xe5   :  { %1786 = vmatpush1.bf16.msra.mxu0 %v4108_v6  ;;  %1950 = vmatpush1.bf16.msra.mxu1 %v4111_v7  ;;  %v4200_v6 = vld [vmem:[#allocation2 + $0x744] ss:$16 sps:$4 sm:$0xff]   ;;  %v4203_v7 = vld [vmem:[#allocation2 + $0x74c] ss:$16 sps:$4 sm:$0xff]  }
  0xe6   :  { %1787 = vmatprep.subr.bf16.mxu0 %v4116_v8  ;;  %1951 = vmatprep.subr.bf16.mxu1 %v4119_v10  ;;  %v4198_v8 = vld [vmem:[#allocation2 + $0x740] ss:$16 sps:$4 sm:$0xff]   ;;  %v4201_v10 = vld [vmem:[#allocation2 + $0x748] ss:$16 sps:$4 sm:$0xff]  }
  0xe9   :  { %1788 = vmatpush1.bf16.msra.mxu0 %v4114_v11  ;;  %1952 = vmatpush1.bf16.msra.mxu1 %v4117_v12  ;;  %v4206_v11 = vld [vmem:[#allocation2 + $0x764] ss:$16 sps:$4 sm:$0xff]   ;;  %v4209_v12 = vld [vmem:[#allocation2 + $0x76c] ss:$16 sps:$4 sm:$0xff]  }
  0xea   :  { %1789 = vmatprep.subr.bf16.mxu0 %v4122_v13  ;;  %1953 = vmatprep.subr.bf16.mxu1 %v4125_v14  ;;  %v4204_v13 = vld [vmem:[#allocation2 + $0x760] ss:$16 sps:$4 sm:$0xff]   ;;  %v4207_v14 = vld [vmem:[#allocation2 + $0x768] ss:$16 sps:$4 sm:$0xff]  }
  0xed   :  { %1790 = vmatpush1.bf16.msra.mxu0 %v4120_v15  ;;  %1954 = vmatpush1.bf16.msra.mxu1 %v4123_v16  ;;  %v4212_v15 = vld [vmem:[#allocation2 + $0x784] ss:$16 sps:$4 sm:$0xff]   ;;  %v4215_v16 = vld [vmem:[#allocation2 + $0x78c] ss:$16 sps:$4 sm:$0xff]  }
  0xee   :  { %1791 = vmatprep.subr.bf16.mxu0 %v4128_v17  ;;  %1955 = vmatprep.subr.bf16.mxu1 %v4131_v18  ;;  %v4210_v17 = vld [vmem:[#allocation2 + $0x780] ss:$16 sps:$4 sm:$0xff]   ;;  %v4213_v18 = vld [vmem:[#allocation2 + $0x788] ss:$16 sps:$4 sm:$0xff]  }
  0xf1   :  { %1792 = vmatpush1.bf16.msra.mxu0 %v4126_v20  ;;  %1956 = vmatpush1.bf16.msra.mxu1 %v4129_v21  ;;  %v4221_v20 = vld [vmem:[#allocation2 + $0x7ac] ss:$16 sps:$4 sm:$0xff]   ;;  %v4216_v21 = vld [vmem:[#allocation2 + $0x7a0] ss:$16 sps:$4 sm:$0xff]  }
  0xf2   :  { %1793 = vmatprep.subr.bf16.mxu0 %v4134_v22  ;;  %1957 = vmatprep.subr.bf16.mxu1 %v4137_v24  ;;  %v4219_v22 = vld [vmem:[#allocation2 + $0x7a8] ss:$16 sps:$4 sm:$0xff]   ;;  %v4224_v24 = vld [vmem:[#allocation2 + $0x7c4] ss:$16 sps:$4 sm:$0xff]  }
  0xf5   :  { %1794 = vmatpush1.bf16.msra.mxu0 %v4132_v9  ;;  %1958 = vmatpush1.bf16.msra.mxu1 %v4135_v27  ;;  %v4227_v9 = vld [vmem:[#allocation2 + $0x7cc] ss:$16 sps:$4 sm:$0xff]   ;;  %v4222_v27 = vld [vmem:[#allocation2 + $0x7c0] ss:$16 sps:$4 sm:$0xff]  }
  0xf6   :  { %1804 = vmatprep.subr.bf16.mxu0 %v4140_v28  ;;  %1968 = vmatprep.subr.bf16.mxu1 %v4143_v29  ;;  %v4225_v28 = vld [vmem:[#allocation2 + $0x7c8] ss:$16 sps:$4 sm:$0xff]   ;;  %v4230_v29 = vld [vmem:[#allocation2 + $0x7e4] ss:$16 sps:$4 sm:$0xff]  }
  0xf8   :  { %1796 = vmatmul.mubr.bf16.vlgmr.msra.gmra.mrb[0].mxu0 %v119_v30  ;;  %1960 = vmatmul.mubr.bf16.vlgmr.msra.gmra.mrb[0].mxu1 %v119_v30  ;;  %v4228_v30 = vld [vmem:[#allocation2 + $0x7e0] ss:$16 sps:$4 sm:$0xff]  }
  0xf9   :  { %1805 = vmatpush1.bf16.msra.mxu0 %v4138_v31  ;;  %1969 = vmatpush1.bf16.msra.mxu1 %v4141_v32  ;;  %v4231_v31 = vld [vmem:[#allocation2 + $0x7e8] ss:$16 sps:$4 sm:$0xff]   ;;  %v4237_v32 = vld [vmem:[#allocation5 + $0x4] ss:$16 sps:$4 sm:$0xff]  }
  0xfa   :  { %1806 = vmatprep.subr.bf16.mxu0 %v4146_v49  ;;  %1970 = vmatprep.subr.bf16.mxu1 %v4149_v33  ;;  %v4240_v49 = vld [vmem:[#allocation5 + $0xc] ss:$16 sps:$4 sm:$0xff]   ;;  %v121_v33 = vpack.c.bf16 %v4675_v25, %v4675_v25  ;;  %v4247_v25 = vld [vmem:[#allocation5 + $0x40] ss:$16 sps:$4 sm:$0xff]  }
  0xfb   :  { %1836 = vmatprep.mubr.bf16.mxu0 %v122_v34  ;;  %2000 = vmatprep.mubr.bf16.mxu1 %v122_v34  ;;  %v4235_v34 = vld [vmem:[#allocation5] ss:$16 sps:$4 sm:$0xff]  }
  0xfd   :  { %1807 = vmatpush1.bf16.msra.mxu0 %v4144_v35  ;;  %1971 = vmatpush1.bf16.msra.mxu1 %v4147_v36  ;;  %v4238_v35 = vld [vmem:[#allocation5 + $0x8] ss:$16 sps:$4 sm:$0xff]   ;;  %v4243_v36 = vld [vmem:[#allocation5 + $0x24] ss:$16 sps:$4 sm:$0xff]  }
  0xfe   :  { %1808 = vmatprep.subr.bf16.mxu0 %v4152_v37  ;;  %1972 = vmatprep.subr.bf16.mxu1 %v4155_v38  ;;  %v4246_v37 = vld [vmem:[#allocation5 + $0x2c] ss:$16 sps:$4 sm:$0xff]   ;;  %v4241_v38 = vld [vmem:[#allocation5 + $0x20] ss:$16 sps:$4 sm:$0xff]  }
 0x101   :  { %1809 = vmatpush1.bf16.msra.mxu0 %v4150_v26  ;;  %1973 = vmatpush1.bf16.msra.mxu1 %v4153_v39  ;;  %v4244_v26 = vld [vmem:[#allocation5 + $0x28] ss:$16 sps:$4 sm:$0xff]   ;;  %v4249_v39 = vld [vmem:[#allocation5 + $0x44] ss:$16 sps:$4 sm:$0xff]  }
 0x102   :  { %1810 = vmatprep.subr.bf16.mxu0 %v4158_v40  ;;  %1974 = vmatprep.subr.bf16.mxu1 %v4161_v41  ;;  %v4252_v40 = vld [vmem:[#allocation5 + $0x4c] ss:$16 sps:$4 sm:$0xff]   ;;  %v4250_v41 = vld [vmem:[#allocation5 + $0x48] ss:$16 sps:$4 sm:$0xff]  }
 0x105   :  { %1811 = vmatpush1.bf16.msra.mxu0 %v4156_v42  ;;  %1975 = vmatpush1.bf16.msra.mxu1 %v4159_v44  ;;  %v4255_v42 = vld [vmem:[#allocation5 + $0x64] ss:$16 sps:$4 sm:$0xff]   ;;  %v4258_v44 = vld [vmem:[#allocation5 + $0x6c] ss:$16 sps:$4 sm:$0xff]  }
 0x106   :  { %1812 = vmatprep.subr.bf16.mxu0 %v4164_v45  ;;  %1976 = vmatprep.subr.bf16.mxu1 %v4167_v46  ;;  %v4253_v45 = vld [vmem:[#allocation5 + $0x60] ss:$16 sps:$4 sm:$0xff]   ;;  %v4256_v46 = vld [vmem:[#allocation5 + $0x68] ss:$16 sps:$4 sm:$0xff]  }
 0x109   :  { %1813 = vmatpush1.bf16.msra.mxu0 %v4162_v47  ;;  %1977 = vmatpush1.bf16.msra.mxu1 %v4165_v48  ;;  %v4261_v47 = vld [vmem:[#allocation5 + $0x84] ss:$16 sps:$4 sm:$0xff]   ;;  %v4264_v48 = vld [vmem:[#allocation5 + $0x8c] ss:$16 sps:$4 sm:$0xff]  }
 0x10a   :  { %1814 = vmatprep.subr.bf16.mxu0 %v4170_v50  ;;  %1978 = vmatprep.subr.bf16.mxu1 %v4173_v51  ;;  %v4259_v50 = vld [vmem:[#allocation5 + $0x80] ss:$16 sps:$4 sm:$0xff]   ;;  %v4262_v51 = vld [vmem:[#allocation5 + $0x88] ss:$16 sps:$4 sm:$0xff]  }
 0x10d   :  { %1815 = vmatpush1.bf16.msra.mxu0 %v4168_v52  ;;  %1979 = vmatpush1.bf16.msra.mxu1 %v4171_v53  ;;  %v4267_v52 = vld [vmem:[#allocation5 + $0xa4] ss:$16 sps:$4 sm:$0xff]   ;;  %v4270_v53 = vld [vmem:[#allocation5 + $0xac] ss:$16 sps:$4 sm:$0xff]  }
 0x10e   :  { %1816 = vmatprep.subr.bf16.mxu0 %v4176_v54  ;;  %1980 = vmatprep.subr.bf16.mxu1 %v4179_v55  ;;  %v4265_v54 = vld [vmem:[#allocation5 + $0xa0] ss:$16 sps:$4 sm:$0xff]   ;;  %v4268_v55 = vld [vmem:[#allocation5 + $0xa8] ss:$16 sps:$4 sm:$0xff]  }
 0x111   :  { %1817 = vmatpush1.bf16.msra.mxu0 %v4174_v56  ;;  %1981 = vmatpush1.bf16.msra.mxu1 %v4177_v57  ;;  %v4273_v56 = vld [vmem:[#allocation5 + $0xc4] ss:$16 sps:$4 sm:$0xff]   ;;  %v4276_v57 = vld [vmem:[#allocation5 + $0xcc] ss:$16 sps:$4 sm:$0xff]  }
 0x112   :  { %1818 = vmatprep.subr.bf16.mxu0 %v4182_v58  ;;  %1982 = vmatprep.subr.bf16.mxu1 %v4185_v59  ;;  %v4271_v58 = vld [vmem:[#allocation5 + $0xc0] ss:$16 sps:$4 sm:$0xff]   ;;  %v4274_v59 = vld [vmem:[#allocation5 + $0xc8] ss:$16 sps:$4 sm:$0xff]  }
 0x115   :  { %1819 = vmatpush1.bf16.msra.mxu0 %v4180_v60  ;;  %1983 = vmatpush1.bf16.msra.mxu1 %v4183_v61  ;;  %v4279_v60 = vld [vmem:[#allocation5 + $0xe4] ss:$16 sps:$4 sm:$0xff]   ;;  %v4282_v61 = vld [vmem:[#allocation5 + $0xec] ss:$16 sps:$4 sm:$0xff]  }
 0x116   :  { %1820 = vmatprep.subr.bf16.mxu0 %v4188_v62  ;;  %1984 = vmatprep.subr.bf16.mxu1 %v4191_v63  ;;  %v4277_v62 = vld [vmem:[#allocation5 + $0xe0] ss:$16 sps:$4 sm:$0xff]   ;;  %v4280_v63 = vld [vmem:[#allocation5 + $0xe8] ss:$16 sps:$4 sm:$0xff]  }
 0x119   :  { %1821 = vmatpush1.bf16.msra.mxu0 %v4186_v0  ;;  %1985 = vmatpush1.bf16.msra.mxu1 %v4189_v1  ;;  %v4285_v0 = vld [vmem:[#allocation5 + $0x104] ss:$16 sps:$4 sm:$0xff]   ;;  %v4288_v1 = vld [vmem:[#allocation5 + $0x10c] ss:$16 sps:$4 sm:$0xff]  }
 0x11a   :  { %1822 = vmatprep.subr.bf16.mxu0 %v4194_v2  ;;  %1986 = vmatprep.subr.bf16.mxu1 %v4197_v3  ;;  %v4283_v2 = vld [vmem:[#allocation5 + $0x100] ss:$16 sps:$4 sm:$0xff]   ;;  %v4286_v3 = vld [vmem:[#allocation5 + $0x108] ss:$16 sps:$4 sm:$0xff]  }
 0x11d   :  { %1823 = vmatpush1.bf16.msra.mxu0 %v4192_v4  ;;  %1987 = vmatpush1.bf16.msra.mxu1 %v4195_v5  ;;  %v4291_v4 = vld [vmem:[#allocation5 + $0x124] ss:$16 sps:$4 sm:$0xff]   ;;  %v4294_v5 = vld [vmem:[#allocation5 + $0x12c] ss:$16 sps:$4 sm:$0xff]  }
 0x11e   :  { %1824 = vmatprep.subr.bf16.mxu0 %v4200_v6  ;;  %1988 = vmatprep.subr.bf16.mxu1 %v4203_v7  ;;  %v4289_v6 = vld [vmem:[#allocation5 + $0x120] ss:$16 sps:$4 sm:$0xff]   ;;  %v4292_v7 = vld [vmem:[#allocation5 + $0x128] ss:$16 sps:$4 sm:$0xff]  }
 0x121   :  { %1825 = vmatpush1.bf16.msra.mxu0 %v4198_v8  ;;  %1989 = vmatpush1.bf16.msra.mxu1 %v4201_v10  ;;  %v4297_v8 = vld [vmem:[#allocation5 + $0x144] ss:$16 sps:$4 sm:$0xff]   ;;  %v4300_v10 = vld [vmem:[#allocation5 + $0x14c] ss:$16 sps:$4 sm:$0xff]  }
 0x122   :  { %1826 = vmatprep.subr.bf16.mxu0 %v4206_v11  ;;  %1990 = vmatprep.subr.bf16.mxu1 %v4209_v12  ;;  %v4295_v11 = vld [vmem:[#allocation5 + $0x140] ss:$16 sps:$4 sm:$0xff]   ;;  %v4298_v12 = vld [vmem:[#allocation5 + $0x148] ss:$16 sps:$4 sm:$0xff]  }
 0x125   :  { %1827 = vmatpush1.bf16.msra.mxu0 %v4204_v13  ;;  %1991 = vmatpush1.bf16.msra.mxu1 %v4207_v14  ;;  %v4303_v13 = vld [vmem:[#allocation5 + $0x164] ss:$16 sps:$4 sm:$0xff]   ;;  %v4306_v14 = vld [vmem:[#allocation5 + $0x16c] ss:$16 sps:$4 sm:$0xff]  }
 0x126   :  { %1828 = vmatprep.subr.bf16.mxu0 %v4212_v15  ;;  %1992 = vmatprep.subr.bf16.mxu1 %v4215_v16  ;;  %v4301_v15 = vld [vmem:[#allocation5 + $0x160] ss:$16 sps:$4 sm:$0xff]   ;;  %v4304_v16 = vld [vmem:[#allocation5 + $0x168] ss:$16 sps:$4 sm:$0xff]  }
 0x129   :  { %1829 = vmatpush1.bf16.msra.mxu0 %v4210_v17  ;;  %1993 = vmatpush1.bf16.msra.mxu1 %v4213_v18  ;;  %v4309_v17 = vld [vmem:[#allocation5 + $0x184] ss:$16 sps:$4 sm:$0xff]   ;;  %v4312_v18 = vld [vmem:[#allocation5 + $0x18c] ss:$16 sps:$4 sm:$0xff]  }
 0x12a   :  { %1830 = vmatprep.subr.bf16.mxu0 %v4218_v19  ;;  %1994 = vmatprep.subr.bf16.mxu1 %v4221_v20  ;;  %v4307_v19 = vld [vmem:[#allocation5 + $0x180] ss:$16 sps:$4 sm:$0xff]   ;;  %v4310_v20 = vld [vmem:[#allocation5 + $0x188] ss:$16 sps:$4 sm:$0xff]  }
 0x12d   :  { %1831 = vmatpush1.bf16.msra.mxu0 %v4216_v21  ;;  %1995 = vmatpush1.bf16.msra.mxu1 %v4219_v22  ;;  %v4315_v21 = vld [vmem:[#allocation5 + $0x1a4] ss:$16 sps:$4 sm:$0xff]   ;;  %v4318_v22 = vld [vmem:[#allocation5 + $0x1ac] ss:$16 sps:$4 sm:$0xff]  }
 0x12e   :  { %1832 = vmatprep.subr.bf16.mxu0 %v4224_v24  ;;  %1996 = vmatprep.subr.bf16.mxu1 %v4227_v9  ;;  %v4313_v24 = vld [vmem:[#allocation5 + $0x1a0] ss:$16 sps:$4 sm:$0xff]   ;;  %v4316_v9 = vld [vmem:[#allocation5 + $0x1a8] ss:$16 sps:$4 sm:$0xff]  }
 0x131   :  { %1833 = vmatpush1.bf16.msra.mxu0 %v4222_v27  ;;  %1997 = vmatpush1.bf16.msra.mxu1 %v4225_v28  ;;  %v4321_v27 = vld [vmem:[#allocation5 + $0x1c4] ss:$16 sps:$4 sm:$0xff]   ;;  %v4324_v28 = vld [vmem:[#allocation5 + $0x1cc] ss:$16 sps:$4 sm:$0xff]  }
 0x132   :  { %1834 = vmatprep.subr.bf16.mxu0 %v4230_v29  ;;  %1998 = vmatprep.subr.bf16.mxu1 %v4233_v23  ;;  %v4319_v29 = vld [vmem:[#allocation5 + $0x1c0] ss:$16 sps:$4 sm:$0xff]   ;;  %v4322_v23 = vld [vmem:[#allocation5 + $0x1c8] ss:$16 sps:$4 sm:$0xff]  }
 0x135   :  { %1835 = vmatpush1.bf16.msra.mxu0 %v4228_v30  ;;  %1999 = vmatpush1.bf16.msra.mxu1 %v4231_v31  ;;  %v4327_v30 = vld [vmem:[#allocation5 + $0x1e4] ss:$16 sps:$4 sm:$0xff]   ;;  %v4330_v31 = vld [vmem:[#allocation5 + $0x1ec] ss:$16 sps:$4 sm:$0xff]  }
 0x136   :  { %2807 = vmatprep.subr.bf16.mxu0 %v4237_v32  ;;  %2889 = vmatprep.subr.bf16.mxu1 %v4240_v49  ;;  %v4325_v32 = vld [vmem:[#allocation5 + $0x1e0] ss:$16 sps:$4 sm:$0xff]   ;;  %v4328_v49 = vld [vmem:[#allocation5 + $0x1e8] ss:$16 sps:$4 sm:$0xff]  }
 0x138   :  { %1837 = vmatmul.mubr.bf16.vlgmr.msra.gmra.mrb[0].mxu0 %v121_v33  ;;  %2001 = vmatmul.mubr.bf16.vlgmr.msra.gmra.mrb[0].mxu1 %v121_v33  ;;  %v4333_v33 = vld [vmem:[#allocation5 + $0x204] ss:$16 sps:$4 sm:$0xff]  }
 0x139   :  { %2808 = vmatpush1.bf16.msra.mxu0 %v4235_v34  ;;  %2890 = vmatpush1.bf16.msra.mxu1 %v4238_v35  ;;  %v4336_v34 = vld [vmem:[#allocation5 + $0x20c] ss:$16 sps:$4 sm:$0xff]   ;;  %v383_v35 = vsub.s32 0, %v4645_v43 }
 0x13a   :  { %2809 = vmatprep.subr.bf16.mxu0 %v4243_v36  ;;  %2891 = vmatprep.subr.bf16.mxu1 %v4246_v37  ;;  %v4687_v36 = vld [vmem:[%s4735_s2] sm:$0xf]  ;;  %v387_v37 = vsub.s32 1, %v4645_v43 }
 0x13d   :  { %2810 = vmatpush1.bf16.msra.mxu0 %v4241_v38  ;;  %2892 = vmatpush1.bf16.msra.mxu1 %v4244_v26  ;;  %v395_v38 = vsub.s32 3, %v4645_v43  ;;  %v384_v26 = vrot.slane %v4687_v36, %v383_v35 }
 0x13e   :  { %2811 = vmatprep.subr.bf16.mxu0 %v4249_v39  ;;  %2893 = vmatprep.subr.bf16.mxu1 %v4252_v40  ;;  %v388_v39 = vrot.slane %v4687_v36, %v387_v37 }
 0x13f   :  { %v396_v40 = vrot.slane %v4687_v36, %v395_v38 }
 0x141   :  { %2812 = vmatpush1.bf16.msra.mxu0 %v4247_v25  ;;  %2894 = vmatpush1.bf16.msra.mxu1 %v4250_v41 }
 0x142   :  { %2813 = vmatprep.subr.bf16.mxu0 %v4255_v42  ;;  %2895 = vmatprep.subr.bf16.mxu1 %v4258_v44 }
 0x145   :  { %2814 = vmatpush1.bf16.msra.mxu0 %v4253_v45  ;;  %2896 = vmatpush1.bf16.msra.mxu1 %v4256_v46 }
 0x146   :  { %2815 = vmatprep.subr.bf16.mxu0 %v4261_v47  ;;  %2897 = vmatprep.subr.bf16.mxu1 %v4264_v48 }
 0x149   :  { %2816 = vmatpush1.bf16.msra.mxu0 %v4259_v50  ;;  %2898 = vmatpush1.bf16.msra.mxu1 %v4262_v51 }
 0x14a   :  { %2817 = vmatprep.subr.bf16.mxu0 %v4267_v52  ;;  %2899 = vmatprep.subr.bf16.mxu1 %v4270_v53 }
 0x14d   :  { %2818 = vmatpush1.bf16.msra.mxu0 %v4265_v54  ;;  %2900 = vmatpush1.bf16.msra.mxu1 %v4268_v55 }
 0x14e   :  { %2819 = vmatprep.subr.bf16.mxu0 %v4273_v56  ;;  %2901 = vmatprep.subr.bf16.mxu1 %v4276_v57  ;;  %v4331_v57 = vld [vmem:[#allocation5 + $0x200] ss:$16 sps:$4 sm:$0xff]  }
 0x151   :  { %2820 = vmatpush1.bf16.msra.mxu0 %v4271_v58  ;;  %2902 = vmatpush1.bf16.msra.mxu1 %v4274_v59  ;;  %v4334_v58 = vld [vmem:[#allocation5 + $0x208] ss:$16 sps:$4 sm:$0xff]  }
 0x152   :  { %2821 = vmatprep.subr.bf16.mxu0 %v4279_v60  ;;  %2903 = vmatprep.subr.bf16.mxu1 %v4282_v61  ;;  %v4339_v60 = vld [vmem:[#allocation5 + $0x224] ss:$16 sps:$4 sm:$0xff]   ;;  %v4342_v61 = vld [vmem:[#allocation5 + $0x22c] ss:$16 sps:$4 sm:$0xff]  }
 0x155   :  { %2822 = vmatpush1.bf16.msra.mxu0 %v4277_v62  ;;  %2904 = vmatpush1.bf16.msra.mxu1 %v4280_v63  ;;  %v4337_v63 = vld [vmem:[#allocation5 + $0x220] ss:$16 sps:$4 sm:$0xff]  }
 0x156   :  { %2823 = vmatprep.subr.bf16.mxu0 %v4285_v0  ;;  %2905 = vmatprep.subr.bf16.mxu1 %v4288_v1  ;;  %v4340_v0 = vld [vmem:[#allocation5 + $0x228] ss:$16 sps:$4 sm:$0xff]   ;;  %v4345_v1 = vld [vmem:[#allocation5 + $0x244] ss:$16 sps:$4 sm:$0xff]  }
 0x159   :  { %2824 = vmatpush1.bf16.msra.mxu0 %v4283_v2  ;;  %2906 = vmatpush1.bf16.msra.mxu1 %v4286_v3  ;;  %v4348_v2 = vld [vmem:[#allocation5 + $0x24c] ss:$16 sps:$4 sm:$0xff]   ;;  %v4343_v3 = vld [vmem:[#allocation5 + $0x240] ss:$16 sps:$4 sm:$0xff]  }
 0x15a   :  { %2825 = vmatprep.subr.bf16.mxu0 %v4291_v4  ;;  %2907 = vmatprep.subr.bf16.mxu1 %v4294_v5  ;;  %v4346_v4 = vld [vmem:[#allocation5 + $0x248] ss:$16 sps:$4 sm:$0xff]   ;;  %v4351_v5 = vld [vmem:[#allocation5 + $0x264] ss:$16 sps:$4 sm:$0xff]  }
 0x15d   :  { %2826 = vmatpush1.bf16.msra.mxu0 %v4289_v6  ;;  %2908 = vmatpush1.bf16.msra.mxu1 %v4292_v7  ;;  %v4354_v6 = vld [vmem:[#allocation5 + $0x26c] ss:$16 sps:$4 sm:$0xff]   ;;  %v4349_v7 = vld [vmem:[#allocation5 + $0x260] ss:$16 sps:$4 sm:$0xff]  }
 0x15e   :  { %2827 = vmatprep.subr.bf16.mxu0 %v4297_v8  ;;  %2909 = vmatprep.subr.bf16.mxu1 %v4300_v10  ;;  %v4352_v8 = vld [vmem:[#allocation5 + $0x268] ss:$16 sps:$4 sm:$0xff]   ;;  %v4357_v10 = vld [vmem:[#allocation5 + $0x284] ss:$16 sps:$4 sm:$0xff]  }
 0x161   :  { %2828 = vmatpush1.bf16.msra.mxu0 %v4295_v11  ;;  %2910 = vmatpush1.bf16.msra.mxu1 %v4298_v12  ;;  %v4360_v11 = vld [vmem:[#allocation5 + $0x28c] ss:$16 sps:$4 sm:$0xff]   ;;  %v4355_v12 = vld [vmem:[#allocation5 + $0x280] ss:$16 sps:$4 sm:$0xff]  }
 0x162   :  { %2829 = vmatprep.subr.bf16.mxu0 %v4303_v13  ;;  %2911 = vmatprep.subr.bf16.mxu1 %v4306_v14  ;;  %v4358_v13 = vld [vmem:[#allocation5 + $0x288] ss:$16 sps:$4 sm:$0xff]   ;;  %v4363_v14 = vld [vmem:[#allocation5 + $0x2a4] ss:$16 sps:$4 sm:$0xff]  }
 0x165   :  { %2830 = vmatpush1.bf16.msra.mxu0 %v4301_v15  ;;  %2912 = vmatpush1.bf16.msra.mxu1 %v4304_v16  ;;  %v4366_v15 = vld [vmem:[#allocation5 + $0x2ac] ss:$16 sps:$4 sm:$0xff]   ;;  %v4361_v16 = vld [vmem:[#allocation5 + $0x2a0] ss:$16 sps:$4 sm:$0xff]  }
 0x166   :  { %2831 = vmatprep.subr.bf16.mxu0 %v4309_v17  ;;  %2913 = vmatprep.subr.bf16.mxu1 %v4312_v18  ;;  %v4364_v17 = vld [vmem:[#allocation5 + $0x2a8] ss:$16 sps:$4 sm:$0xff]   ;;  %v4369_v18 = vld [vmem:[#allocation5 + $0x2c4] ss:$16 sps:$4 sm:$0xff]  }
 0x169   :  { %2832 = vmatpush1.bf16.msra.mxu0 %v4307_v19  ;;  %2914 = vmatpush1.bf16.msra.mxu1 %v4310_v20  ;;  %v4372_v19 = vld [vmem:[#allocation5 + $0x2cc] ss:$16 sps:$4 sm:$0xff]   ;;  %v4367_v20 = vld [vmem:[#allocation5 + $0x2c0] ss:$16 sps:$4 sm:$0xff]  }
 0x16a   :  { %2833 = vmatprep.subr.bf16.mxu0 %v4315_v21  ;;  %2915 = vmatprep.subr.bf16.mxu1 %v4318_v22  ;;  %v4370_v21 = vld [vmem:[#allocation5 + $0x2c8] ss:$16 sps:$4 sm:$0xff]   ;;  %v4375_v22 = vld [vmem:[#allocation5 + $0x2e4] ss:$16 sps:$4 sm:$0xff]  }
 0x16d   :  { %2834 = vmatpush1.bf16.msra.mxu0 %v4313_v24  ;;  %2916 = vmatpush1.bf16.msra.mxu1 %v4316_v9  ;;  %v4378_v24 = vld [vmem:[#allocation5 + $0x2ec] ss:$16 sps:$4 sm:$0xff]   ;;  %v4373_v9 = vld [vmem:[#allocation5 + $0x2e0] ss:$16 sps:$4 sm:$0xff]  }
 0x16e   :  { %2835 = vmatprep.subr.bf16.mxu0 %v4321_v27  ;;  %2917 = vmatprep.subr.bf16.mxu1 %v4324_v28  ;;  %v4376_v27 = vld [vmem:[#allocation5 + $0x2e8] ss:$16 sps:$4 sm:$0xff]   ;;  %v4381_v28 = vld [vmem:[#allocation5 + $0x304] ss:$16 sps:$4 sm:$0xff]  }
 0x171   :  { %2836 = vmatpush1.bf16.msra.mxu0 %v4319_v29  ;;  %2918 = vmatpush1.bf16.msra.mxu1 %v4322_v23  ;;  %v4384_v29 = vld [vmem:[#allocation5 + $0x30c] ss:$16 sps:$4 sm:$0xff]   ;;  %v4379_v23 = vld [vmem:[#allocation5 + $0x300] ss:$16 sps:$4 sm:$0xff]  }
 0x172   :  { %2837 = vmatprep.subr.bf16.mxu0 %v4327_v30  ;;  %2919 = vmatprep.subr.bf16.mxu1 %v4330_v31  ;;  %v4382_v30 = vld [vmem:[#allocation5 + $0x308] ss:$16 sps:$4 sm:$0xff]   ;;  %v4387_v31 = vld [vmem:[#allocation5 + $0x324] ss:$16 sps:$4 sm:$0xff]  }
 0x175   :  { %2838 = vmatpush1.bf16.msra.mxu0 %v4325_v32  ;;  %2920 = vmatpush1.bf16.msra.mxu1 %v4328_v49  ;;  %v4390_v32 = vld [vmem:[#allocation5 + $0x32c] ss:$16 sps:$4 sm:$0xff]   ;;  %v4385_v49 = vld [vmem:[#allocation5 + $0x320] ss:$16 sps:$4 sm:$0xff]  }
 0x176   :  { %2848 = vmatprep.subr.bf16.mxu0 %v4333_v33  ;;  %2930 = vmatprep.subr.bf16.mxu1 %v4336_v34  ;;  %v4388_v33 = vld [vmem:[#allocation5 + $0x328] ss:$16 sps:$4 sm:$0xff]   ;;  %v4393_v34 = vld [vmem:[#allocation5 + $0x344] ss:$16 sps:$4 sm:$0xff]  }
 0x20b   :  { %v1838_v25 = vpop.f32.mrb[0].mxu0  ;;  %v4700_v41 = vpop.f32.mrb[0].mxu1 }
 0x20c   :  { %v3800_v42 = vadd.f32 %v1838_v25, %v384_v26  ;;  %v1840_v44 = vpop.f32.mrb[1].mxu0  ;;  %v2004_v45 = vpop.f32.mrb[1].mxu1  ;;  %v4396_v26 = vld [vmem:[#allocation5 + $0x34c] ss:$16 sps:$4 sm:$0xff]   ;;  %v4399_v25 = vld [vmem:[#allocation5 + $0x364] ss:$16 sps:$4 sm:$0xff]  }
 0x20d   :  { %v3801_v46 = vadd.f32 %v1840_v44, %v388_v39  ;;  %v3803_v47 = vadd.f32 %v2004_v45, %v396_v40  ;;  %v1842_v48 = vpop.f32.mrb[2].mxu0  ;;  %v2006_v50 = vpop.f32.mrb[2].mxu1  ;;  %v4391_v39 = vld [vmem:[#allocation5 + $0x340] ss:$16 sps:$4 sm:$0xff]   ;;  %v4394_v40 = vld [vmem:[#allocation5 + $0x348] ss:$16 sps:$4 sm:$0xff]  }
 0x20e   :  { %v2009_v51 = vmax.f32 %v3800_v42, 0.0  ;;  %v1843_v52 = vpop.f32.mrb[3].mxu0  ;;  %v2007_v53 = vpop.f32.mrb[3].mxu1  ;;  %v4402_v42 = vld [vmem:[#allocation5 + $0x36c] ss:$16 sps:$4 sm:$0xff]  }
 0x20f   :  { %v2010_v54 = vmax.f32 %v3801_v46, 0.0  ;;  %v2012_v55 = vmax.f32 %v3803_v47, 0.0  ;;  %v4397_v44 = vld [vmem:[#allocation5 + $0x360] ss:$16 sps:$4 sm:$0xff]   ;;  %v4400_v45 = vld [vmem:[#allocation5 + $0x368] ss:$16 sps:$4 sm:$0xff]  }
 0x210   :  { %v2013_v59 = vpack.c.bf16 %v2009_v51, %v2009_v51  ;;  %v4405_v46 = vld [vmem:[#allocation5 + $0x384] ss:$16 sps:$4 sm:$0xff]   ;;  %v4408_v47 = vld [vmem:[#allocation5 + $0x38c] ss:$16 sps:$4 sm:$0xff]   ;;  %v4403_v48 = vld [vmem:[#allocation5 + $0x380] ss:$16 sps:$4 sm:$0xff]  }
 0x211   :  { %v2014_v56 = vpack.c.bf16 %v2010_v54, %v2010_v54  ;;  %v2016_v62 = vpack.c.bf16 %v2012_v55, %v2012_v55  ;;  %v4406_v50 = vld [vmem:[#allocation5 + $0x388] ss:$16 sps:$4 sm:$0xff]   ;;  %v391_v51 = vsub.s32 2, %v4645_v43  ;;  %v4411_v52 = vld [vmem:[#allocation5 + $0x3a4] ss:$16 sps:$4 sm:$0xff]  }
 0x212   :  { %v4414_v53 = vld [vmem:[#allocation5 + $0x3ac] ss:$16 sps:$4 sm:$0xff]   ;;  %v4409_v54 = vld [vmem:[#allocation5 + $0x3a0] ss:$16 sps:$4 sm:$0xff]   ;;  %v4412_v55 = vld [vmem:[#allocation5 + $0x3a8] ss:$16 sps:$4 sm:$0xff]  }
 0x213   :  { %2839 = vmatprep.mubr.bf16.mxu0 %v2014_v56  ;;  %2921 = vmatprep.mubr.bf16.mxu1 %v2014_v56  ;;  %v392_v56 = vrot.slane %v4687_v36, %v391_v51  ;;  %v4427_v36 = vld [vmem:[#allocation7 + $0x40] sm:$0xff]  }
 0x214   :  { %2840 = vmatmul.mubr.bf16.vlgmr.msra.gmra.mrb[4].mxu0 %v2013_v59  ;;  %2922 = vmatmul.mubr.bf16.vlgmr.msra.gmra.mrb[4].mxu1 %v2013_v59  ;;  %v4415_v59 = vld [vmem:[#allocation5 + $0x3c0] ss:$16 sps:$4 sm:$0xff]  }
 0x215   :  { %2849 = vmatpush1.bf16.msra.mxu0 %v4331_v57  ;;  %2931 = vmatpush1.bf16.msra.mxu1 %v4334_v58  ;;  %v4417_v57 = vld [vmem:[#allocation5 + $0x3c4] ss:$16 sps:$4 sm:$0xff]   ;;  %v4420_v58 = vld [vmem:[#allocation5 + $0x3cc] ss:$16 sps:$4 sm:$0xff]  }
 0x216   :  { %2880 = vmatprep.mubr.bf16.mxu0 %v2016_v62  ;;  %2962 = vmatprep.mubr.bf16.mxu1 %v2016_v62  ;;  %v4423_v62 = vld [vmem:[#allocation5 + $0x3e4] ss:$16 sps:$4 sm:$0xff]  }
 0x217   :  { %2850 = vmatprep.subr.bf16.mxu0 %v4339_v60  ;;  %2932 = vmatprep.subr.bf16.mxu1 %v4342_v61  ;;  %v4418_v60 = vld [vmem:[#allocation5 + $0x3c8] ss:$16 sps:$4 sm:$0xff]   ;;  %v3802_v61 = vadd.f32 %v4700_v41, %v392_v56 }
 0x218   :  { %v4431_v41 = vld [vmem:[#allocation7 + $0x48] sm:$0xff]  }
 0x219   :  { %2851 = vmatpush1.bf16.msra.mxu0 %v4337_v63  ;;  %2933 = vmatpush1.bf16.msra.mxu1 %v4340_v0  ;;  %v4426_v63 = vld [vmem:[#allocation5 + $0x3ec] ss:$16 sps:$4 sm:$0xff]   ;;  %v4421_v0 = vld [vmem:[#allocation5 + $0x3e0] ss:$16 sps:$4 sm:$0xff]  }
 0x21a   :  { %2852 = vmatprep.subr.bf16.mxu0 %v4345_v1  ;;  %2934 = vmatprep.subr.bf16.mxu1 %v4348_v2  ;;  %v4424_v1 = vld [vmem:[#allocation5 + $0x3e8] ss:$16 sps:$4 sm:$0xff]   ;;  %v2011_v2 = vmax.f32 %v3802_v61, 0.0 }
 0x21d   :  { %2853 = vmatpush1.bf16.msra.mxu0 %v4343_v3  ;;  %2935 = vmatpush1.bf16.msra.mxu1 %v4346_v4  ;;  %v4428_v3 = vld [vmem:[#allocation7 + $0xc0] sm:$0xff]  }
 0x21e   :  { %2854 = vmatprep.subr.bf16.mxu0 %v4351_v5  ;;  %2936 = vmatprep.subr.bf16.mxu1 %v4354_v6  ;;  %v4429_v4 = vld [vmem:[#allocation7] sm:$0xff]   ;;  %v2015_v6 = vpack.c.bf16 %v2011_v2, %v2011_v2 }
 0x21f   :  { %v4430_v5 = vld [vmem:[#allocation7 + $0x80] sm:$0xff]  }
 0x221   :  { %2855 = vmatpush1.bf16.msra.mxu0 %v4349_v7  ;;  %2937 = vmatpush1.bf16.msra.mxu1 %v4352_v8  ;;  %v4432_v7 = vld [vmem:[#allocation7 + $0xc8] sm:$0xff]  }
 0x222   :  { %2856 = vmatprep.subr.bf16.mxu0 %v4357_v10  ;;  %2938 = vmatprep.subr.bf16.mxu1 %v4360_v11  ;;  %v4433_v8 = vld [vmem:[#allocation7 + $0x8] sm:$0xff]   ;;  %v4435_v11 = vld [vmem:[#allocation7 + $0x50] sm:$0xff]  }
 0x223   :  { %v4434_v10 = vld [vmem:[#allocation7 + $0x88] sm:$0xff]  }
 0x225   :  { %2857 = vmatpush1.bf16.msra.mxu0 %v4355_v12  ;;  %2939 = vmatpush1.bf16.msra.mxu1 %v4358_v13  ;;  %v4436_v12 = vld [vmem:[#allocation7 + $0xd0] sm:$0xff]  }
 0x226   :  { %2858 = vmatprep.subr.bf16.mxu0 %v4363_v14  ;;  %2940 = vmatprep.subr.bf16.mxu1 %v4366_v15  ;;  %v4437_v13 = vld [vmem:[#allocation7 + $0x10] sm:$0xff]   ;;  %v4439_v15 = vld [vmem:[#allocation7 + $0x58] sm:$0xff]  }
 0x227   :  { %v4438_v14 = vld [vmem:[#allocation7 + $0x90] sm:$0xff]  }
 0x229   :  { %2859 = vmatpush1.bf16.msra.mxu0 %v4361_v16  ;;  %2941 = vmatpush1.bf16.msra.mxu1 %v4364_v17  ;;  %v4440_v16 = vld [vmem:[#allocation7 + $0xd8] sm:$0xff]  }
 0x22a   :  { %2860 = vmatprep.subr.bf16.mxu0 %v4369_v18  ;;  %2942 = vmatprep.subr.bf16.mxu1 %v4372_v19  ;;  %v4441_v17 = vld [vmem:[#allocation7 + $0x18] sm:$0xff]   ;;  %v4443_v19 = vld [vmem:[#allocation7 + $0x60] sm:$0xff]  }
 0x22b   :  { %v4442_v18 = vld [vmem:[#allocation7 + $0x98] sm:$0xff]  }
 0x22d   :  { %2861 = vmatpush1.bf16.msra.mxu0 %v4367_v20  ;;  %2943 = vmatpush1.bf16.msra.mxu1 %v4370_v21  ;;  %v4444_v20 = vld [vmem:[#allocation7 + $0xe0] sm:$0xff]  }
 0x22e   :  { %2862 = vmatprep.subr.bf16.mxu0 %v4375_v22  ;;  %2944 = vmatprep.subr.bf16.mxu1 %v4378_v24  ;;  %v4445_v21 = vld [vmem:[#allocation7 + $0x20] sm:$0xff]   ;;  %v4447_v24 = vld [vmem:[#allocation7 + $0x68] sm:$0xff]  }
 0x22f   :  { %v4446_v22 = vld [vmem:[#allocation7 + $0xa0] sm:$0xff]  }
 0x231   :  { %2863 = vmatpush1.bf16.msra.mxu0 %v4373_v9  ;;  %2945 = vmatpush1.bf16.msra.mxu1 %v4376_v27  ;;  %v4448_v9 = vld [vmem:[#allocation7 + $0xe8] sm:$0xff]  }
 0x232   :  { %2864 = vmatprep.subr.bf16.mxu0 %v4381_v28  ;;  %2946 = vmatprep.subr.bf16.mxu1 %v4384_v29  ;;  %v4449_v27 = vld [vmem:[#allocation7 + $0x28] sm:$0xff]   ;;  %v4451_v29 = vld [vmem:[#allocation7 + $0x70] sm:$0xff]  }
 0x233   :  { %v4450_v28 = vld [vmem:[#allocation7 + $0xa8] sm:$0xff]  }
 0x235   :  { %2865 = vmatpush1.bf16.msra.mxu0 %v4379_v23  ;;  %2947 = vmatpush1.bf16.msra.mxu1 %v4382_v30  ;;  %v4452_v23 = vld [vmem:[#allocation7 + $0xf0] sm:$0xff]  }
 0x236   :  { %2866 = vmatprep.subr.bf16.mxu0 %v4387_v31  ;;  %2948 = vmatprep.subr.bf16.mxu1 %v4390_v32  ;;  %v4453_v30 = vld [vmem:[#allocation7 + $0x30] sm:$0xff]   ;;  %v4455_v32 = vld [vmem:[#allocation7 + $0x78] sm:$0xff]  }
 0x237   :  { %v4454_v31 = vld [vmem:[#allocation7 + $0xb0] sm:$0xff]  }
 0x239   :  { %2867 = vmatpush1.bf16.msra.mxu0 %v4385_v49  ;;  %2949 = vmatpush1.bf16.msra.mxu1 %v4388_v33  ;;  %v4456_v49 = vld [vmem:[#allocation7 + $0xf8] sm:$0xff]  }
 0x23a   :  { %2868 = vmatprep.subr.bf16.mxu0 %v4393_v34  ;;  %2950 = vmatprep.subr.bf16.mxu1 %v4396_v26  ;;  %v4457_v33 = vld [vmem:[#allocation7 + $0x38] sm:$0xff]   ;;  %v2145_v26 = vld [vmem:[%s4737_s4] sm:$0xf] }
 0x23b   :  { %v4458_v34 = vld [vmem:[#allocation7 + $0xb8] sm:$0xff]  }
 0x23d   :  { %2869 = vmatpush1.bf16.msra.mxu0 %v4391_v39  ;;  %2951 = vmatpush1.bf16.msra.mxu1 %v4394_v40  ;;  %v2150_v39 = vrot.slane %v2145_v26, %v383_v35  ;;  %v2158_v40 = vrot.slane %v2145_v26, %v391_v51 }
 0x23e   :  { %2870 = vmatprep.subr.bf16.mxu0 %v4399_v25  ;;  %2952 = vmatprep.subr.bf16.mxu1 %v4402_v42  ;;  %v2154_v25 = vrot.slane %v2145_v26, %v387_v37  ;;  %v2162_v42 = vrot.slane %v2145_v26, %v395_v38 }
 0x241   :  { %2871 = vmatpush1.bf16.msra.mxu0 %v4397_v44  ;;  %2953 = vmatpush1.bf16.msra.mxu1 %v4400_v45 }
 0x242   :  { %2872 = vmatprep.subr.bf16.mxu0 %v4405_v46  ;;  %2954 = vmatprep.subr.bf16.mxu1 %v4408_v47 }
 0x245   :  { %2873 = vmatpush1.bf16.msra.mxu0 %v4403_v48  ;;  %2955 = vmatpush1.bf16.msra.mxu1 %v4406_v50 }
 0x246   :  { %2874 = vmatprep.subr.bf16.mxu0 %v4411_v52  ;;  %2956 = vmatprep.subr.bf16.mxu1 %v4414_v53 }
 0x249   :  { %2875 = vmatpush1.bf16.msra.mxu0 %v4409_v54  ;;  %2957 = vmatpush1.bf16.msra.mxu1 %v4412_v55 }
 0x24a   :  { %2876 = vmatprep.subr.bf16.mxu0 %v4417_v57  ;;  %2958 = vmatprep.subr.bf16.mxu1 %v4420_v58 }
 0x24d   :  { %2877 = vmatpush1.bf16.msra.mxu0 %v4415_v59  ;;  %2959 = vmatpush1.bf16.msra.mxu1 %v4418_v60 }
 0x24e   :  { %2878 = vmatprep.subr.bf16.mxu0 %v4423_v62  ;;  %2960 = vmatprep.subr.bf16.mxu1 %v4426_v63  ;;  %v3723_v63 = vld [vmem:[%s4739_s6] ss:$0 sm:$0xff] }
 0x251   :  { %2879 = vmatpush1.bf16.msra.mxu0 %v4421_v0  ;;  %2961 = vmatpush1.bf16.msra.mxu1 %v4424_v1 }
 0x252   :  { %3756 = vmatprep.subr.bf16.mxu0 %v4427_v36  ;;  %3778 = vmatprep.subr.bf16.mxu1 %v4428_v3 }
 0x254   :  { %2881 = vmatmul.mubr.bf16.vlgmr.msra.gmra.mrb[4].mxu0 %v2015_v6  ;;  %2963 = vmatmul.mubr.bf16.vlgmr.msra.gmra.mrb[4].mxu1 %v2015_v6 }
 0x255   :  { %3757 = vmatpush3.bf16.msra.mxu0 %v4429_v4  ;;  %3779 = vmatpush3.bf16.msra.mxu1 %v4430_v5 }
 0x256   :  { %3758 = vmatprep.subr.bf16.mxu0 %v4431_v41  ;;  %3780 = vmatprep.subr.bf16.mxu1 %v4432_v7 }
 0x259   :  { %3759 = vmatpush3.bf16.msra.mxu0 %v4433_v8  ;;  %3781 = vmatpush3.bf16.msra.mxu1 %v4434_v10 }
 0x25a   :  { %3760 = vmatprep.subr.bf16.mxu0 %v4435_v11  ;;  %3782 = vmatprep.subr.bf16.mxu1 %v4436_v12 }
 0x25d   :  { %3761 = vmatpush3.bf16.msra.mxu0 %v4437_v13  ;;  %3783 = vmatpush3.bf16.msra.mxu1 %v4438_v14 }
 0x25e   :  { %3762 = vmatprep.subr.bf16.mxu0 %v4439_v15  ;;  %3784 = vmatprep.subr.bf16.mxu1 %v4440_v16 }
 0x261   :  { %3763 = vmatpush3.bf16.msra.mxu0 %v4441_v17  ;;  %3785 = vmatpush3.bf16.msra.mxu1 %v4442_v18 }
 0x262   :  { %3764 = vmatprep.subr.bf16.mxu0 %v4443_v19  ;;  %3786 = vmatprep.subr.bf16.mxu1 %v4444_v20 }
 0x265   :  { %3765 = vmatpush3.bf16.msra.mxu0 %v4445_v21  ;;  %3787 = vmatpush3.bf16.msra.mxu1 %v4446_v22 }
 0x266   :  { %3766 = vmatprep.subr.bf16.mxu0 %v4447_v24  ;;  %3788 = vmatprep.subr.bf16.mxu1 %v4448_v9 }
 0x269   :  { %3767 = vmatpush3.bf16.msra.mxu0 %v4449_v27  ;;  %3789 = vmatpush3.bf16.msra.mxu1 %v4450_v28 }
 0x26a   :  { %3768 = vmatprep.subr.bf16.mxu0 %v4451_v29  ;;  %3790 = vmatprep.subr.bf16.mxu1 %v4452_v23 }
 0x26d   :  { %3769 = vmatpush3.bf16.msra.mxu0 %v4453_v30  ;;  %3791 = vmatpush3.bf16.msra.mxu1 %v4454_v31 }
 0x26e   :  { %3770 = vmatprep.subr.bf16.mxu0 %v4455_v32  ;;  %3792 = vmatprep.subr.bf16.mxu1 %v4456_v49 }
 0x271   :  { %3771 = vmatpush3.bf16.msra.mxu0 %v4457_v33  ;;  %3793 = vmatpush3.bf16.msra.mxu1 %v4458_v34 }
 0x327   :  { %v2882_v44 = vpop.f32.mrb[4].mxu0  ;;  %v2964_v45 = vpop.f32.mrb[4].mxu1 }
 0x328   :  { %v3804_v46 = vadd.f32 %v2882_v44, %v2150_v39  ;;  %v3806_v47 = vadd.f32 %v2964_v45, %v2158_v40  ;;  %v2884_v48 = vpop.f32.mrb[5].mxu0  ;;  %v2966_v50 = vpop.f32.mrb[5].mxu1 }
 0x329   :  { %v3805_v52 = vadd.f32 %v2884_v48, %v2154_v25  ;;  %v3807_v53 = vadd.f32 %v2966_v50, %v2162_v42  ;;  %v2886_v54 = vpop.f32.mrb[6].mxu0  ;;  %v2968_v55 = vpop.f32.mrb[6].mxu1 }
 0x32a   :  { %v2971_v35 = vmax.f32 %v3804_v46, 0.0  ;;  %v2973_v56 = vmax.f32 %v3806_v47, 0.0  ;;  %v2887_v57 = vpop.f32.mrb[7].mxu0  ;;  %v2969_v51 = vpop.f32.mrb[7].mxu1 }
 0x32b   :  { %v2972_v58 = vmax.f32 %v3805_v52, 0.0  ;;  %v2974_v59 = vmax.f32 %v3807_v53, 0.0 }
 0x32c   :  { %v2975_v43 = vpack.c.bf16 %v2971_v35, %v2971_v35  ;;  %v2977_v38 = vpack.c.bf16 %v2973_v56, %v2973_v56 }
 0x32d   :  { %v2976_v37 = vpack.c.bf16 %v2972_v58, %v2972_v58  ;;  %v2978_v60 = vpack.c.bf16 %v2974_v59, %v2974_v59 }
 0x32f   :  { %3274 = vmatprep.mubr.bf16.mxu0 %v2976_v37  ;;  %3314 = vmatprep.mubr.bf16.mxu1 %v2978_v60 }
 0x330   :  { %3275 = vmatmul.mubr.bf16.vlgmr.msra.gmra.mrb[8].mxu0 %v2975_v43  ;;  %3315 = vmatmul.mubr.bf16.vlgmr.msra.gmra.mrb[8].mxu1 %v2977_v38 }
 0x403   :  { %v3772_v61 = vpop.f32.mrb[8].mxu0  ;;  %v3794_v62 = vpop.f32.mrb[8].mxu1 }
 0x404   :  { %v3773_v0 = vpop.f32.mrb[9].mxu0  ;;  %v3795_v1 = vpop.f32.mrb[9].mxu1 }
 0x405   :  { %v3774_v2 = vadd.f32 %v3773_v0, %v3772_v61  ;;  %v3796_v36 = vadd.f32 %v3795_v1, %v3794_v62  ;;  %v3775_v3 = vpop.f32.mrb[10].mxu0  ;;  %v3797_v4 = vpop.f32.mrb[10].mxu1 }
 0x406   :  { %v3776_v5 = vpop.f32.mrb[11].mxu0  ;;  %v3798_v6 = vpop.f32.mrb[11].mxu1 }
 0x407   :  { %v3277_v41 = vadd.f32 %v3774_v2, %v3723_v63 }
 0x409   :  { %v3317_v7 = vadd.f32 %v3796_v36, %v3277_v41 }
 0x40b   :  { %3322 = vst [vmem:[#allocation8] sm:$0x3] %v3317_v7 }
 0x40c   :  { %4536 = shalt.err (!%p4533_p0)
}
 0x40d   :  { %s4537_s25 = scalar_lea.hbm %s4740_s7, 32 }
 0x40e   :  { %p4538_p1 = scmp.ne.s32.totalorder %s4740_s7, %s4537_s25  ;;  %p4541_p2 = scmp.lt.u32.totalorder %s4537_s25, %s4740_s7 }
 0x410   :  { %p4543_p3 = pnand %p4541_p2, %p4538_p1 }
 0x412   :  { %4546 = shalt.err (!%p4543_p3)
}
 0x413   :  { %3332 = dma.vmem_to_hbm [thread:$0]  %s3330_s23, 32, %s4740_s7, [#allocation4]  }
 0x414   :  { %4551 = dma.done.wait [#allocation4], 32  }
 0x415   :  { %4552 = vsyncadd [#allocation4], 4294967264 }
 0x416   :  { %3336 = vsyncpa [#allocation3], 1 }
 0x417   :  { %3337 = vsyncpa [#allocation6], 1 }
 0x418   :  { %3338 = vsyncpa [#allocation4], 1 }

</bundles_post_ra>
